<compile_context>
chip_gen: v5e
topology: v5e:2x2
jax: 0.10.0
libtpu: 0.0.40
codegen_flags: <defaults>
</compile_context>

<pallas_src>
import functools
import math

import jax
import jax.numpy as jnp
from jax import lax
from jax.experimental import pallas as pl
from jax.experimental.pallas import tpu as pltpu

# ----------------------------- model dims -----------------------------------
D_MODEL = 32
D_INNER = 64
N_STATE = 16
DT_RANK = 4
KSIZE = 3
EPS = 1e-5


# ----------------------------- Pallas kernel --------------------------------
def residual_block_kernel(
    bb, chunk,          # static Python ints, bound via functools.partial
    x_ref,              # (Bb, L, D_MODEL)            f32
    wnorm_ref,          # (1, D_MODEL)                 f32
    win_ref,            # (D_MODEL, 2*D_INNER)         bf16
    bin_ref,            # (1, 2*D_INNER)               f32
    convw_ref,          # (KSIZE, D_INNER)             f32
    convb_ref,          # (1, D_INNER)                 f32
    wx_ref,             # (D_INNER, DT_RANK+2*N_STATE) bf16
    wdt_ref,            # (DT_RANK, D_INNER)           bf16
    bdt_ref,            # (1, D_INNER)                 f32
    a_ref,              # (N_STATE, D_INNER)  = (-exp(A_log)).T, f32
    wout_ref,           # (D_INNER, D_MODEL)           bf16
    bout_ref,           # (1, D_MODEL)                 f32
    out_ref,            # (Bb, L, D_MODEL)             f32
    da_scr,             # VMEM (L, N_STATE, Bb*D_INNER)
    dbu_scr,            # VMEM (L, N_STATE, Bb*D_INNER)
    ce_scr,             # VMEM (L, N_STATE, Bb*D_INNER)
    y_scr,              # VMEM (L, Bb*D_INNER)
):
    Bb = bb
    _, L, _ = x_ref.shape
    BD = Bb * D_INNER

    x3 = x_ref[...]                                    # (Bb, L, D_MODEL)
    xf = x3.reshape(Bb * L, D_MODEL)                   # leading-dim collapse (free)

    # ---- RMSNorm ----
    ms = jnp.mean(xf * xf, axis=-1, keepdims=True)
    xn = xf * lax.rsqrt(ms + EPS) * wnorm_ref[...]

    # ---- in_proj: (Bb*L, 2*D_INNER) -> x-branch + residual gate ----
    xz = jnp.dot(xn.astype(jnp.bfloat16), win_ref[...],
                 preferred_element_type=jnp.float32) + bin_ref[...]
    xa = xz[:, :D_INNER]
    res = xz[:, D_INNER:]

    # ---- causal depthwise conv1d over time (axis 1), padding=K-1, trunc to L ----
    xa3 = xa.reshape(Bb, L, D_INNER)
    cw = convw_ref[...]                                # (KSIZE, D_INNER)
    acc = jnp.zeros((Bb, L, D_INNER), jnp.float32)
    for k in range(KSIZE):                             # static unroll, K=3
        s = KSIZE - 1 - k                              # lookback shift
        if s == 0:
            sh = xa3
        else:
            sh = jnp.concatenate(
                [jnp.zeros((Bb, s, D_INNER), jnp.float32), xa3[:, :L - s, :]],
                axis=1)
        acc = acc + sh * cw[k][None, None, :]
    conv = acc + convb_ref[...]
    xc3 = conv * jax.nn.sigmoid(conv)                  # SiLU
    xc = xc3.reshape(Bb * L, D_INNER)

    # ---- x_proj -> (delta_low, B, C) ----
    dbc = jnp.dot(xc.astype(jnp.bfloat16), wx_ref[...],
                  preferred_element_type=jnp.float32)
    d_lo = dbc[:, :DT_RANK]
    Bm = dbc[:, DT_RANK:DT_RANK + N_STATE]
    Cm = dbc[:, DT_RANK + N_STATE:]

    # ---- dt_proj + softplus ----
    delta = jax.nn.softplus(
        jnp.dot(d_lo.astype(jnp.bfloat16), wdt_ref[...],
                preferred_element_type=jnp.float32) + bdt_ref[...])   # (Bb*L, D_INNER)

    # ---- repack into the lane-dense scan layout: columns are b*D_INNER + d ----
    delta3 = delta.reshape(Bb, L, D_INNER)
    Bm3 = Bm.reshape(Bb, L, N_STATE)
    Cm3 = Cm.reshape(Bb, L, N_STATE)

    delta_p = jnp.concatenate([delta3[b] for b in range(Bb)], axis=-1)  # (L, BD)
    u_p = jnp.concatenate([xc3[b] for b in range(Bb)], axis=-1)         # (L, BD)
    du_p = delta_p * u_p

    a_tile = jnp.concatenate([a_ref[...]] * Bb, axis=-1)                # (N, BD)

    b_exp = jnp.concatenate(
        [jnp.broadcast_to(Bm3[b][:, :, None], (L, N_STATE, D_INNER))
         for b in range(Bb)], axis=-1)                                  # (L, N, BD)
    c_exp = jnp.concatenate(
        [jnp.broadcast_to(Cm3[b][:, :, None], (L, N_STATE, D_INNER))
         for b in range(Bb)], axis=-1)                                  # (L, N, BD)

    # hoisted per-timestep work: the recurrence below is only FMA + reduce
    da_scr[...] = jnp.exp(delta_p[:, None, :] * a_tile[None, :, :])
    dbu_scr[...] = du_p[:, None, :] * b_exp
    ce_scr[...] = c_exp

    # ---- selective scan: chunk-unrolled, lane-dense (N_STATE, BD) state ----
    # NOTE: the reference parallel_scan does NOT add the D*u skip term.
    num_chunks = L // chunk

    def chunk_body(c, state):
        base = pl.multiple_of(c * chunk, chunk)
        rows = []
        for j in range(chunk):                          # static unroll
            t = base + j
            state = da_scr[t] * state + dbu_scr[t]      # (N, BD)
            rows.append(jnp.sum(state * ce_scr[t], axis=0, keepdims=True))
        y_scr[pl.ds(base, chunk), :] = jnp.concatenate(rows, axis=0)
        return state

    lax.fori_loop(0, num_chunks, chunk_body,
                  jnp.zeros((N_STATE, BD), jnp.float32))

    # ---- unpack, gate, out_proj, residual add ----
    yp = y_scr[...]                                                     # (L, BD)
    y_flat = jnp.concatenate(
        [yp[:, b * D_INNER:(b + 1) * D_INNER] for b in range(Bb)],
        axis=0)                                                         # (Bb*L, D_INNER)
    y_g = y_flat * (res * jax.nn.sigmoid(res))
    out = jnp.dot(y_g.astype(jnp.bfloat16), wout_ref[...],
                  preferred_element_type=jnp.float32) + bout_ref[...]
    out_ref[...] = (out + xf).reshape(Bb, L, D_MODEL)


# ----------------------------- wrapper ---------------------------------------
@jax.jit
def residual_block(x, params):
    Bn, L, Dm = x.shape
    assert Dm == D_MODEL

    Bb = 2 if Bn % 2 == 0 else 1        # pack 2 sequences -> 128-lane scan state
    chunk = math.gcd(L, 8)              # inner unroll of the scan
    BD = Bb * D_INNER

    # static parameter transforms done once, outside the kernel
    a_neg_t = -jnp.exp(params["a_log"]).T                 # (N_STATE, D_INNER)
    bf = lambda w: w.astype(jnp.bfloat16)                 # MXU operands only

    full = lambda shp: pl.BlockSpec(shp, lambda g: (0,) * len(shp))

    kernel = functools.partial(residual_block_kernel, Bb, chunk)

    return pl.pallas_call(
        kernel,
        out_shape=jax.ShapeDtypeStruct((Bn, L, D_MODEL), jnp.float32),
        grid_spec=pltpu.PrefetchScalarGridSpec(
            num_scalar_prefetch=0,
            grid=(Bn // Bb,),
            in_specs=[
                pl.BlockSpec((Bb, L, D_MODEL), lambda g: (g, 0, 0)),    # x
                full((1, D_MODEL)),                                     # norm w
                full((D_MODEL, 2 * D_INNER)),                           # W_in (bf16)
                full((1, 2 * D_INNER)),                                 # b_in
                full((KSIZE, D_INNER)),                                 # conv w
                full((1, D_INNER)),                                     # conv b
                full((D_INNER, DT_RANK + 2 * N_STATE)),                 # W_x (bf16)
                full((DT_RANK, D_INNER)),                               # W_dt (bf16)
                full((1, D_INNER)),                                     # b_dt
                full((N_STATE, D_INNER)),                               # (-exp(A_log)).T
                full((D_INNER, D_MODEL)),                               # W_out (bf16)
                full((1, D_MODEL)),                                     # b_out
            ],
            out_specs=pl.BlockSpec((Bb, L, D_MODEL), lambda g: (g, 0, 0)),
            scratch_shapes=[
                pltpu.VMEM((L, N_STATE, BD), jnp.float32),   # dA
                pltpu.VMEM((L, N_STATE, BD), jnp.float32),   # dBu
                pltpu.VMEM((L, N_STATE, BD), jnp.float32),   # C lane-broadcast
                pltpu.VMEM((L, BD), jnp.float32),            # y (packed)
            ],
        ),
        compiler_params=pltpu.CompilerParams(
            dimension_semantics=("parallel",)),              # batch blocks independent
    )(
        x,
        params["w_norm"], bf(params["w_in"]), params["b_in"],
        params["w_conv"], params["b_conv"], bf(params["w_x"]),
        bf(params["w_dt"]), params["b_dt"], a_neg_t,
        bf(params["w_out"]), params["b_out"],
    )


# ----------------------------- pure-JAX reference ----------------------------
def reference(x, params):
    wnorm = params["w_norm"][0]
    ms = jnp.mean(x * x, axis=-1, keepdims=True)
    xn = x * lax.rsqrt(ms + EPS) * wnorm

    xz = xn @ params["w_in"] + params["b_in"][0]
    xa, res = xz[..., :D_INNER], xz[..., D_INNER:]

    conv = jnp.zeros_like(xa)
    L = x.shape[1]
    for k in range(KSIZE):
        s = KSIZE - 1 - k
        shifted = xa if s == 0 else jnp.concatenate(
            [jnp.zeros_like(xa[:, :s]), xa[:, : L - s]], axis=1)
        conv = conv + shifted * params["w_conv"][k]
    conv = conv + params["b_conv"][0]
    xc = jax.nn.silu(conv)

    dbc = xc @ params["w_x"]
    d_lo = dbc[..., :DT_RANK]
    Bm = dbc[..., DT_RANK:DT_RANK + N_STATE]
    Cm = dbc[..., DT_RANK + N_STATE:]
    delta = jax.nn.softplus(d_lo @ params["w_dt"] + params["b_dt"][0])
    A = -jnp.exp(params["a_log"])

    state = jnp.zeros((x.shape[0], D_INNER, N_STATE), jnp.float32)
    ys = []
    for t in range(L):
        dA = jnp.exp(delta[:, t, :, None] * A[None])
        dBu = delta[:, t, :, None] * Bm[:, t, None, :] * xc[:, t, :, None]
        state = dA * state + dBu
        ys.append(jnp.sum(state * Cm[:, t, None, :], axis=-1))
    y = jnp.stack(ys, axis=1)
    y = y * jax.nn.silu(res)
    out = y @ params["w_out"] + params["b_out"][0]
    return out + x


# ----------------------------- main -------------------------------------------
if __name__ == "__main__":
    key = jax.random.PRNGKey(0)
    ks = jax.random.split(key, 12)

    def rnd(k, shape, scale=0.1):
        return (scale * jax.random.normal(k, shape)).astype(jnp.float32)

    params = {
        # RMSNorm weight (torch init is ones; kept ones for fidelity)
        "w_norm": jnp.ones((1, D_MODEL), jnp.float32),
        # in_proj: torch Linear(d_model, 2*d_inner) -> pre-transposed
        "w_in": rnd(ks[0], (D_MODEL, 2 * D_INNER)),
        "b_in": rnd(ks[1], (1, 2 * D_INNER)),
        # depthwise conv1d weight (d_inner, 1, K) -> stored as (K, d_inner)
        "w_conv": rnd(ks[2], (KSIZE, D_INNER)),
        "b_conv": rnd(ks[3], (1, D_INNER)),
        # x_proj (no bias), pre-transposed
        "w_x": rnd(ks[4], (D_INNER, DT_RANK + 2 * N_STATE)),
        # dt_proj, pre-transposed
        "w_dt": rnd(ks[5], (DT_RANK, D_INNER)),
        "b_dt": rnd(ks[6], (1, D_INNER)),
        # A_log
        "a_log": rnd(ks[7], (D_INNER, N_STATE)),
        # out_proj, pre-transposed
        "w_out": rnd(ks[8], (D_INNER, D_MODEL)),
        "b_out": rnd(ks[9], (1, D_MODEL)),
        # self.D exists in the module but is unused by parallel_scan / forward.
        "d_skip": rnd(ks[10], (D_INNER,)),
    }

    batch, seq_len = 2, 8
    x = jax.random.normal(ks[11], (batch, seq_len, D_MODEL), jnp.float32)

    out = residual_block(x, params)
    out = jax.block_until_ready(out)

    ref = reference(x, params)
    assert out.shape == (batch, seq_len, D_MODEL)
    assert jnp.allclose(out, ref, rtol=2e-2, atol=2e-2), (
        float(jnp.max(jnp.abs(out - ref))))

    print("KERNEL_OK")
</pallas_src>

<mosaic_0001>
module attributes {stable_mosaic.version = 11 : i64} {
  func.func @residual_block_kernel(%arg0: i32, %arg1: memref<2x8x32xf32, #tpu.memory_space<vmem>>, %arg2: memref<1x32xf32, #tpu.memory_space<vmem>>, %arg3: memref<32x128xbf16, #tpu.memory_space<vmem>>, %arg4: memref<1x128xf32, #tpu.memory_space<vmem>>, %arg5: memref<3x64xf32, #tpu.memory_space<vmem>>, %arg6: memref<1x64xf32, #tpu.memory_space<vmem>>, %arg7: memref<64x36xbf16, #tpu.memory_space<vmem>>, %arg8: memref<4x64xbf16, #tpu.memory_space<vmem>>, %arg9: memref<1x64xf32, #tpu.memory_space<vmem>>, %arg10: memref<16x64xf32, #tpu.memory_space<vmem>>, %arg11: memref<64x32xbf16, #tpu.memory_space<vmem>>, %arg12: memref<1x32xf32, #tpu.memory_space<vmem>>, %arg13: memref<2x8x32xf32, #tpu.memory_space<vmem>>, %arg14: memref<8x16x128xf32, #tpu.memory_space<vmem>>, %arg15: memref<8x16x128xf32, #tpu.memory_space<vmem>>, %arg16: memref<8x16x128xf32, #tpu.memory_space<vmem>>, %arg17: memref<8x128xf32, #tpu.memory_space<vmem>>) attributes {dimension_semantics = [#tpu.dimension_semantics<parallel>], iteration_bounds = array<i64: 1>, scalar_prefetch = 0 : i64, scratch_operands = 4 : i64, tpu.core_type = #tpu.core_type<tc>, window_params = [{transform_indices = @transform_0, window_bounds = array<i64: 2, 8, 32>}, {pipeline_mode = #tpu.pipeline_mode<synchronous>, transform_indices = @transform_1, window_bounds = array<i64: 1, 32>}, {pipeline_mode = #tpu.pipeline_mode<synchronous>, transform_indices = @transform_2, window_bounds = array<i64: 32, 128>}, {pipeline_mode = #tpu.pipeline_mode<synchronous>, transform_indices = @transform_3, window_bounds = array<i64: 1, 128>}, {pipeline_mode = #tpu.pipeline_mode<synchronous>, transform_indices = @transform_4, window_bounds = array<i64: 3, 64>}, {pipeline_mode = #tpu.pipeline_mode<synchronous>, transform_indices = @transform_5, window_bounds = array<i64: 1, 64>}, {pipeline_mode = #tpu.pipeline_mode<synchronous>, transform_indices = @transform_6, window_bounds = array<i64: 64, 36>}, {pipeline_mode = #tpu.pipeline_mode<synchronous>, transform_indices = @transform_7, window_bounds = array<i64: 4, 64>}, {pipeline_mode = #tpu.pipeline_mode<synchronous>, transform_indices = @transform_8, window_bounds = array<i64: 1, 64>}, {pipeline_mode = #tpu.pipeline_mode<synchronous>, transform_indices = @transform_9, window_bounds = array<i64: 16, 64>}, {pipeline_mode = #tpu.pipeline_mode<synchronous>, transform_indices = @transform_10, window_bounds = array<i64: 64, 32>}, {pipeline_mode = #tpu.pipeline_mode<synchronous>, transform_indices = @transform_11, window_bounds = array<i64: 1, 32>}, {transform_indices = @transform_12, window_bounds = array<i64: 2, 8, 32>}]} {
    %c0 = arith.constant 0 : index
    %c0_0 = arith.constant 0 : index
    %c0_1 = arith.constant 0 : index
    %0 = vector.load %arg1[%c0, %c0_0, %c0_1] : memref<2x8x32xf32, #tpu.memory_space<vmem>>, vector<2x8x32xf32>
    %1 = vector.shape_cast %0 : vector<2x8x32xf32> to vector<16x32xf32>
    %2 = arith.mulf %1, %1 : vector<16x32xf32>
    %cst = arith.constant dense<0.000000e+00> : vector<16xf32>
    %3 = vector.multi_reduction <add>, %2, %cst [1] : vector<16x32xf32> to vector<16xf32>
    %4 = vector.shape_cast %3 : vector<16xf32> to vector<16x1xf32>
    %cst_2 = arith.constant 3.200000e+01 : f32
    %5 = vector.broadcast %cst_2 : f32 to vector<16x1xf32>
    %6 = arith.divf %4, %5 : vector<16x1xf32>
    %cst_3 = arith.constant 9.99999974E-6 : f32
    %7 = vector.broadcast %cst_3 : f32 to vector<16x1xf32>
    %8 = arith.addf %6, %7 : vector<16x1xf32>
    %9 = math.rsqrt %8 : vector<16x1xf32>
    %10 = vector.broadcast %9 : vector<16x1xf32> to vector<16x32xf32>
    %11 = arith.mulf %1, %10 : vector<16x32xf32>
    %c0_4 = arith.constant 0 : index
    %c0_5 = arith.constant 0 : index
    %12 = vector.load %arg2[%c0_4, %c0_5] : memref<1x32xf32, #tpu.memory_space<vmem>>, vector<1x32xf32>
    %13 = vector.broadcast %12 : vector<1x32xf32> to vector<16x32xf32>
    %14 = arith.mulf %11, %13 : vector<16x32xf32>
    %15 = arith.truncf %14 : vector<16x32xf32> to vector<16x32xbf16>
    %c0_6 = arith.constant 0 : index
    %c0_7 = arith.constant 0 : index
    %16 = vector.load %arg3[%c0_6, %c0_7] : memref<32x128xbf16, #tpu.memory_space<vmem>>, vector<32x128xbf16>
    %cst_8 = arith.constant dense<0.000000e+00> : vector<16x128xf32>
    %17 = tpu.matmul %15, %16, %cst_8 {dimension_numbers = #tpu.dot_dimension_numbers<[1], [0], [0], [1], [0, 0, 1, 1], [], []>} : vector<16x32xbf16>, vector<32x128xbf16>, vector<16x128xf32> -> vector<16x128xf32>
    %c0_9 = arith.constant 0 : index
    %c0_10 = arith.constant 0 : index
    %18 = vector.load %arg4[%c0_9, %c0_10] : memref<1x128xf32, #tpu.memory_space<vmem>>, vector<1x128xf32>
    %19 = vector.broadcast %18 : vector<1x128xf32> to vector<16x128xf32>
    %20 = arith.addf %17, %19 : vector<16x128xf32>
    %21 = vector.extract_strided_slice %20 {offsets = [0, 0], sizes = [16, 64], strides = [1, 1]} : vector<16x128xf32> to vector<16x64xf32>
    %22 = vector.extract_strided_slice %20 {offsets = [0, 64], sizes = [16, 64], strides = [1, 1]} : vector<16x128xf32> to vector<16x64xf32>
    %23 = vector.shape_cast %21 : vector<16x64xf32> to vector<2x8x64xf32>
    %c0_11 = arith.constant 0 : index
    %c0_12 = arith.constant 0 : index
    %24 = vector.load %arg5[%c0_11, %c0_12] : memref<3x64xf32, #tpu.memory_space<vmem>>, vector<3x64xf32>
    %cst_13 = arith.constant 0.000000e+00 : f32
    %25 = vector.broadcast %cst_13 : f32 to vector<2x8x64xf32>
    %cst_14 = arith.constant 0.000000e+00 : f32
    %26 = vector.broadcast %cst_14 : f32 to vector<2x2x64xf32>
    %27 = vector.extract_strided_slice %23 {offsets = [0, 0, 0], sizes = [2, 6, 64], strides = [1, 1, 1]} : vector<2x8x64xf32> to vector<2x6x64xf32>
    %28 = tpu.concatenate %26, %27 in 1 : vector<2x2x64xf32>, vector<2x6x64xf32> -> vector<2x8x64xf32>
    %29 = vector.extract_strided_slice %24 {offsets = [0, 0], sizes = [1, 64], strides = [1, 1]} : vector<3x64xf32> to vector<1x64xf32>
    %30 = vector.shape_cast %29 : vector<1x64xf32> to vector<64xf32>
    %31 = vector.shape_cast %30 : vector<64xf32> to vector<1x1x64xf32>
    %32 = vector.broadcast %31 : vector<1x1x64xf32> to vector<2x8x64xf32>
    %33 = arith.mulf %28, %32 : vector<2x8x64xf32>
    %34 = arith.addf %25, %33 : vector<2x8x64xf32>
    %cst_15 = arith.constant 0.000000e+00 : f32
    %35 = vector.broadcast %cst_15 : f32 to vector<2x1x64xf32>
    %36 = vector.extract_strided_slice %23 {offsets = [0, 0, 0], sizes = [2, 7, 64], strides = [1, 1, 1]} : vector<2x8x64xf32> to vector<2x7x64xf32>
    %37 = tpu.concatenate %35, %36 in 1 : vector<2x1x64xf32>, vector<2x7x64xf32> -> vector<2x8x64xf32>
    %38 = vector.extract_strided_slice %24 {offsets = [1, 0], sizes = [1, 64], strides = [1, 1]} : vector<3x64xf32> to vector<1x64xf32>
    %39 = vector.shape_cast %38 : vector<1x64xf32> to vector<64xf32>
    %40 = vector.shape_cast %39 : vector<64xf32> to vector<1x1x64xf32>
    %41 = vector.broadcast %40 : vector<1x1x64xf32> to vector<2x8x64xf32>
    %42 = arith.mulf %37, %41 : vector<2x8x64xf32>
    %43 = arith.addf %34, %42 : vector<2x8x64xf32>
    %44 = vector.extract_strided_slice %24 {offsets = [2, 0], sizes = [1, 64], strides = [1, 1]} : vector<3x64xf32> to vector<1x64xf32>
    %45 = vector.shape_cast %44 : vector<1x64xf32> to vector<64xf32>
    %46 = vector.shape_cast %45 : vector<64xf32> to vector<1x1x64xf32>
    %47 = vector.broadcast %46 : vector<1x1x64xf32> to vector<2x8x64xf32>
    %48 = arith.mulf %23, %47 : vector<2x8x64xf32>
    %49 = arith.addf %43, %48 : vector<2x8x64xf32>
    %c0_16 = arith.constant 0 : index
    %c0_17 = arith.constant 0 : index
    %50 = vector.load %arg6[%c0_16, %c0_17] : memref<1x64xf32, #tpu.memory_space<vmem>>, vector<1x64xf32>
    %51 = vector.shape_cast %50 : vector<1x64xf32> to vector<1x1x64xf32>
    %52 = vector.broadcast %51 : vector<1x1x64xf32> to vector<2x8x64xf32>
    %53 = arith.addf %49, %52 : vector<2x8x64xf32>
    %54 = arith.negf %53 : vector<2x8x64xf32>
    %55 = math.exp %54 : vector<2x8x64xf32>
    %cst_18 = arith.constant 1.000000e+00 : f32
    %56 = vector.broadcast %cst_18 : f32 to vector<2x8x64xf32>
    %57 = arith.addf %56, %55 : vector<2x8x64xf32>
    %58 = arith.divf %56, %57 : vector<2x8x64xf32>
    %59 = arith.mulf %53, %58 : vector<2x8x64xf32>
    %60 = vector.shape_cast %59 : vector<2x8x64xf32> to vector<16x64xf32>
    %61 = arith.truncf %60 : vector<16x64xf32> to vector<16x64xbf16>
    %c0_19 = arith.constant 0 : index
    %c0_20 = arith.constant 0 : index
    %62 = vector.load %arg7[%c0_19, %c0_20] : memref<64x36xbf16, #tpu.memory_space<vmem>>, vector<64x36xbf16>
    %cst_21 = arith.constant dense<0.000000e+00> : vector<16x36xf32>
    %63 = tpu.matmul %61, %62, %cst_21 {dimension_numbers = #tpu.dot_dimension_numbers<[1], [0], [0], [1], [0, 0, 1, 1], [], []>} : vector<16x64xbf16>, vector<64x36xbf16>, vector<16x36xf32> -> vector<16x36xf32>
    %64 = vector.extract_strided_slice %63 {offsets = [0, 0], sizes = [16, 4], strides = [1, 1]} : vector<16x36xf32> to vector<16x4xf32>
    %65 = vector.extract_strided_slice %63 {offsets = [0, 4], sizes = [16, 16], strides = [1, 1]} : vector<16x36xf32> to vector<16x16xf32>
    %66 = vector.extract_strided_slice %63 {offsets = [0, 20], sizes = [16, 16], strides = [1, 1]} : vector<16x36xf32> to vector<16x16xf32>
    %67 = arith.truncf %64 : vector<16x4xf32> to vector<16x4xbf16>
    %c0_22 = arith.constant 0 : index
    %c0_23 = arith.constant 0 : index
    %68 = vector.load %arg8[%c0_22, %c0_23] : memref<4x64xbf16, #tpu.memory_space<vmem>>, vector<4x64xbf16>
    %cst_24 = arith.constant dense<0.000000e+00> : vector<16x64xf32>
    %69 = tpu.matmul %67, %68, %cst_24 {dimension_numbers = #tpu.dot_dimension_numbers<[1], [0], [0], [1], [0, 0, 1, 1], [], []>} : vector<16x4xbf16>, vector<4x64xbf16>, vector<16x64xf32> -> vector<16x64xf32>
    %c0_25 = arith.constant 0 : index
    %c0_26 = arith.constant 0 : index
    %70 = vector.load %arg9[%c0_25, %c0_26] : memref<1x64xf32, #tpu.memory_space<vmem>>, vector<1x64xf32>
    %71 = vector.broadcast %70 : vector<1x64xf32> to vector<16x64xf32>
    %72 = arith.addf %69, %71 : vector<16x64xf32>
    %cst_27 = arith.constant 0.000000e+00 : f32
    %73 = vector.broadcast %cst_27 : f32 to vector<16x64xf32>
    %74 = arith.maximumf %72, %73 : vector<16x64xf32>
    %75 = vector.broadcast %cst_27 : f32 to vector<16x64xf32>
    %76 = arith.subf %72, %75 : vector<16x64xf32>
    %77 = arith.cmpf one, %76, %76 : vector<16x64xf32>
    %78 = vector.broadcast %cst_27 : f32 to vector<16x64xf32>
    %79 = arith.addf %72, %78 : vector<16x64xf32>
    %80 = math.absf %76 : vector<16x64xf32>
    %cst_28 = arith.constant 0.000000e+00 : f32
    %81 = vector.broadcast %cst_28 : f32 to vector<16x64xf32>
    %82 = arith.subf %81, %80 : vector<16x64xf32>
    %83 = math.exp %82 : vector<16x64xf32>
    %84 = math.log1p %83 : vector<16x64xf32>
    %85 = arith.addf %74, %84 : vector<16x64xf32>
    %86 = arith.select %77, %79, %85 : vector<16x64xi1>, vector<16x64xf32>
    %87 = vector.shape_cast %86 : vector<16x64xf32> to vector<2x8x64xf32>
    %88 = vector.shape_cast %65 : vector<16x16xf32> to vector<2x8x16xf32>
    %89 = vector.shape_cast %66 : vector<16x16xf32> to vector<2x8x16xf32>
    %90 = vector.extract_strided_slice %87 {offsets = [0, 0, 0], sizes = [1, 8, 64], strides = [1, 1, 1]} : vector<2x8x64xf32> to vector<1x8x64xf32>
    %91 = vector.shape_cast %90 : vector<1x8x64xf32> to vector<8x64xf32>
    %92 = vector.extract_strided_slice %87 {offsets = [1, 0, 0], sizes = [1, 8, 64], strides = [1, 1, 1]} : vector<2x8x64xf32> to vector<1x8x64xf32>
    %93 = vector.shape_cast %92 : vector<1x8x64xf32> to vector<8x64xf32>
    %94 = tpu.concatenate %91, %93 in 1 : vector<8x64xf32>, vector<8x64xf32> -> vector<8x128xf32>
    %95 = vector.extract_strided_slice %59 {offsets = [0, 0, 0], sizes = [1, 8, 64], strides = [1, 1, 1]} : vector<2x8x64xf32> to vector<1x8x64xf32>
    %96 = vector.shape_cast %95 : vector<1x8x64xf32> to vector<8x64xf32>
    %97 = vector.extract_strided_slice %59 {offsets = [1, 0, 0], sizes = [1, 8, 64], strides = [1, 1, 1]} : vector<2x8x64xf32> to vector<1x8x64xf32>
    %98 = vector.shape_cast %97 : vector<1x8x64xf32> to vector<8x64xf32>
    %99 = tpu.concatenate %96, %98 in 1 : vector<8x64xf32>, vector<8x64xf32> -> vector<8x128xf32>
    %100 = arith.mulf %94, %99 : vector<8x128xf32>
    %c0_29 = arith.constant 0 : index
    %c0_30 = arith.constant 0 : index
    %101 = vector.load %arg10[%c0_29, %c0_30] : memref<16x64xf32, #tpu.memory_space<vmem>>, vector<16x64xf32>
    %102 = tpu.concatenate %101, %101 in 1 : vector<16x64xf32>, vector<16x64xf32> -> vector<16x128xf32>
    %103 = vector.extract_strided_slice %88 {offsets = [0, 0, 0], sizes = [1, 8, 16], strides = [1, 1, 1]} : vector<2x8x16xf32> to vector<1x8x16xf32>
    %104 = vector.shape_cast %103 : vector<1x8x16xf32> to vector<8x16xf32>
    %105 = vector.shape_cast %104 : vector<8x16xf32> to vector<8x16x1xf32>
    %106 = vector.shape_cast %105 : vector<8x16x1xf32> to vector<8x16x1xf32>
    %107 = vector.broadcast %106 : vector<8x16x1xf32> to vector<8x16x64xf32>
    %108 = vector.extract_strided_slice %88 {offsets = [1, 0, 0], sizes = [1, 8, 16], strides = [1, 1, 1]} : vector<2x8x16xf32> to vector<1x8x16xf32>
    %109 = vector.shape_cast %108 : vector<1x8x16xf32> to vector<8x16xf32>
    %110 = vector.shape_cast %109 : vector<8x16xf32> to vector<8x16x1xf32>
    %111 = vector.shape_cast %110 : vector<8x16x1xf32> to vector<8x16x1xf32>
    %112 = vector.broadcast %111 : vector<8x16x1xf32> to vector<8x16x64xf32>
    %113 = tpu.concatenate %107, %112 in 2 : vector<8x16x64xf32>, vector<8x16x64xf32> -> vector<8x16x128xf32>
    %114 = vector.extract_strided_slice %89 {offsets = [0, 0, 0], sizes = [1, 8, 16], strides = [1, 1, 1]} : vector<2x8x16xf32> to vector<1x8x16xf32>
    %115 = vector.shape_cast %114 : vector<1x8x16xf32> to vector<8x16xf32>
    %116 = vector.shape_cast %115 : vector<8x16xf32> to vector<8x16x1xf32>
    %117 = vector.shape_cast %116 : vector<8x16x1xf32> to vector<8x16x1xf32>
    %118 = vector.broadcast %117 : vector<8x16x1xf32> to vector<8x16x64xf32>
    %119 = vector.extract_strided_slice %89 {offsets = [1, 0, 0], sizes = [1, 8, 16], strides = [1, 1, 1]} : vector<2x8x16xf32> to vector<1x8x16xf32>
    %120 = vector.shape_cast %119 : vector<1x8x16xf32> to vector<8x16xf32>
    %121 = vector.shape_cast %120 : vector<8x16xf32> to vector<8x16x1xf32>
    %122 = vector.shape_cast %121 : vector<8x16x1xf32> to vector<8x16x1xf32>
    %123 = vector.broadcast %122 : vector<8x16x1xf32> to vector<8x16x64xf32>
    %124 = tpu.concatenate %118, %123 in 2 : vector<8x16x64xf32>, vector<8x16x64xf32> -> vector<8x16x128xf32>
    %125 = vector.shape_cast %94 : vector<8x128xf32> to vector<8x1x128xf32>
    %126 = vector.shape_cast %102 : vector<16x128xf32> to vector<1x16x128xf32>
    %127 = vector.broadcast %125 : vector<8x1x128xf32> to vector<8x16x128xf32>
    %128 = vector.broadcast %126 : vector<1x16x128xf32> to vector<8x16x128xf32>
    %129 = arith.mulf %127, %128 : vector<8x16x128xf32>
    %130 = math.exp %129 : vector<8x16x128xf32>
    %c0_31 = arith.constant 0 : index
    %c0_32 = arith.constant 0 : index
    %c0_33 = arith.constant 0 : index
    %131 = vector.load %arg14[%c0_31, %c0_32, %c0_33] : memref<8x16x128xf32, #tpu.memory_space<vmem>>, vector<8x16x128xf32>
    tpu.vector_store %arg14[%c0_31, %c0_32, %c0_33], %130 {strides = array<i32>} : memref<8x16x128xf32, #tpu.memory_space<vmem>>, vector<8x16x128xf32>,
    %132 = vector.shape_cast %100 : vector<8x128xf32> to vector<8x1x128xf32>
    %133 = vector.broadcast %132 : vector<8x1x128xf32> to vector<8x16x128xf32>
    %134 = arith.mulf %133, %113 : vector<8x16x128xf32>
    %c0_34 = arith.constant 0 : index
    %c0_35 = arith.constant 0 : index
    %c0_36 = arith.constant 0 : index
    %135 = vector.load %arg15[%c0_34, %c0_35, %c0_36] : memref<8x16x128xf32, #tpu.memory_space<vmem>>, vector<8x16x128xf32>
    tpu.vector_store %arg15[%c0_34, %c0_35, %c0_36], %134 {strides = array<i32>} : memref<8x16x128xf32, #tpu.memory_space<vmem>>, vector<8x16x128xf32>,
    %c0_37 = arith.constant 0 : index
    %c0_38 = arith.constant 0 : index
    %c0_39 = arith.constant 0 : index
    %136 = vector.load %arg16[%c0_37, %c0_38, %c0_39] : memref<8x16x128xf32, #tpu.memory_space<vmem>>, vector<8x16x128xf32>
    tpu.vector_store %arg16[%c0_37, %c0_38, %c0_39], %124 {strides = array<i32>} : memref<8x16x128xf32, #tpu.memory_space<vmem>>, vector<8x16x128xf32>,
    %cst_40 = arith.constant 0.000000e+00 : f32
    %137 = vector.broadcast %cst_40 : f32 to vector<16x128xf32>
    %c0_i32 = arith.constant 0 : i32
    %c8_i32 = arith.constant 8 : i32
    %138 = arith.muli %c0_i32, %c8_i32 : i32
    %139 = tpu.assume_multiple %138, 8 : i32
    %c0_i32_41 = arith.constant 0 : i32
    %140 = arith.addi %139, %c0_i32_41 : i32
    %141 = arith.index_cast %140 : i32 to index
    %c0_42 = arith.constant 0 : index
    %c0_43 = arith.constant 0 : index
    %142 = vector.load %arg14[%141, %c0_42, %c0_43] : memref<8x16x128xf32, #tpu.memory_space<vmem>>, vector<1x16x128xf32>
    %143 = vector.shape_cast %142 : vector<1x16x128xf32> to vector<16x128xf32>
    %144 = arith.mulf %143, %137 : vector<16x128xf32>
    %145 = arith.index_cast %140 : i32 to index
    %c0_44 = arith.constant 0 : index
    %c0_45 = arith.constant 0 : index
    %146 = vector.load %arg15[%145, %c0_44, %c0_45] : memref<8x16x128xf32, #tpu.memory_space<vmem>>, vector<1x16x128xf32>
    %147 = vector.shape_cast %146 : vector<1x16x128xf32> to vector<16x128xf32>
    %148 = arith.addf %144, %147 : vector<16x128xf32>
    %149 = arith.index_cast %140 : i32 to index
    %c0_46 = arith.constant 0 : index
    %c0_47 = arith.constant 0 : index
    %150 = vector.load %arg16[%149, %c0_46, %c0_47] : memref<8x16x128xf32, #tpu.memory_space<vmem>>, vector<1x16x128xf32>
    %151 = vector.shape_cast %150 : vector<1x16x128xf32> to vector<16x128xf32>
    %152 = arith.mulf %148, %151 : vector<16x128xf32>
    %cst_48 = arith.constant dense<0.000000e+00> : vector<128xf32>
    %153 = vector.multi_reduction <add>, %152, %cst_48 [0] : vector<16x128xf32> to vector<128xf32>
    %154 = vector.shape_cast %153 : vector<128xf32> to vector<1x128xf32>
    %c1_i32 = arith.constant 1 : i32
    %155 = arith.addi %139, %c1_i32 : i32
    %156 = arith.index_cast %155 : i32 to index
    %c0_49 = arith.constant 0 : index
    %c0_50 = arith.constant 0 : index
    %157 = vector.load %arg14[%156, %c0_49, %c0_50] : memref<8x16x128xf32, #tpu.memory_space<vmem>>, vector<1x16x128xf32>
    %158 = vector.shape_cast %157 : vector<1x16x128xf32> to vector<16x128xf32>
    %159 = arith.mulf %158, %148 : vector<16x128xf32>
    %160 = arith.index_cast %155 : i32 to index
    %c0_51 = arith.constant 0 : index
    %c0_52 = arith.constant 0 : index
    %161 = vector.load %arg15[%160, %c0_51, %c0_52] : memref<8x16x128xf32, #tpu.memory_space<vmem>>, vector<1x16x128xf32>
    %162 = vector.shape_cast %161 : vector<1x16x128xf32> to vector<16x128xf32>
    %163 = arith.addf %159, %162 : vector<16x128xf32>
    %164 = arith.index_cast %155 : i32 to index
    %c0_53 = arith.constant 0 : index
    %c0_54 = arith.constant 0 : index
    %165 = vector.load %arg16[%164, %c0_53, %c0_54] : memref<8x16x128xf32, #tpu.memory_space<vmem>>, vector<1x16x128xf32>
    %166 = vector.shape_cast %165 : vector<1x16x128xf32> to vector<16x128xf32>
    %167 = arith.mulf %163, %166 : vector<16x128xf32>
    %cst_55 = arith.constant dense<0.000000e+00> : vector<128xf32>
    %168 = vector.multi_reduction <add>, %167, %cst_55 [0] : vector<16x128xf32> to vector<128xf32>
    %169 = vector.shape_cast %168 : vector<128xf32> to vector<1x128xf32>
    %c2_i32 = arith.constant 2 : i32
    %170 = arith.addi %139, %c2_i32 : i32
    %171 = arith.index_cast %170 : i32 to index
    %c0_56 = arith.constant 0 : index
    %c0_57 = arith.constant 0 : index
    %172 = vector.load %arg14[%171, %c0_56, %c0_57] : memref<8x16x128xf32, #tpu.memory_space<vmem>>, vector<1x16x128xf32>
    %173 = vector.shape_cast %172 : vector<1x16x128xf32> to vector<16x128xf32>
    %174 = arith.mulf %173, %163 : vector<16x128xf32>
    %175 = arith.index_cast %170 : i32 to index
    %c0_58 = arith.constant 0 : index
    %c0_59 = arith.constant 0 : index
    %176 = vector.load %arg15[%175, %c0_58, %c0_59] : memref<8x16x128xf32, #tpu.memory_space<vmem>>, vector<1x16x128xf32>
    %177 = vector.shape_cast %176 : vector<1x16x128xf32> to vector<16x128xf32>
    %178 = arith.addf %174, %177 : vector<16x128xf32>
    %179 = arith.index_cast %170 : i32 to index
    %c0_60 = arith.constant 0 : index
    %c0_61 = arith.constant 0 : index
    %180 = vector.load %arg16[%179, %c0_60, %c0_61] : memref<8x16x128xf32, #tpu.memory_space<vmem>>, vector<1x16x128xf32>
    %181 = vector.shape_cast %180 : vector<1x16x128xf32> to vector<16x128xf32>
    %182 = arith.mulf %178, %181 : vector<16x128xf32>
    %cst_62 = arith.constant dense<0.000000e+00> : vector<128xf32>
    %183 = vector.multi_reduction <add>, %182, %cst_62 [0] : vector<16x128xf32> to vector<128xf32>
    %184 = vector.shape_cast %183 : vector<128xf32> to vector<1x128xf32>
    %c3_i32 = arith.constant 3 : i32
    %185 = arith.addi %139, %c3_i32 : i32
    %186 = arith.index_cast %185 : i32 to index
    %c0_63 = arith.constant 0 : index
    %c0_64 = arith.constant 0 : index
    %187 = vector.load %arg14[%186, %c0_63, %c0_64] : memref<8x16x128xf32, #tpu.memory_space<vmem>>, vector<1x16x128xf32>
    %188 = vector.shape_cast %187 : vector<1x16x128xf32> to vector<16x128xf32>
    %189 = arith.mulf %188, %178 : vector<16x128xf32>
    %190 = arith.index_cast %185 : i32 to index
    %c0_65 = arith.constant 0 : index
    %c0_66 = arith.constant 0 : index
    %191 = vector.load %arg15[%190, %c0_65, %c0_66] : memref<8x16x128xf32, #tpu.memory_space<vmem>>, vector<1x16x128xf32>
    %192 = vector.shape_cast %191 : vector<1x16x128xf32> to vector<16x128xf32>
    %193 = arith.addf %189, %192 : vector<16x128xf32>
    %194 = arith.index_cast %185 : i32 to index
    %c0_67 = arith.constant 0 : index
    %c0_68 = arith.constant 0 : index
    %195 = vector.load %arg16[%194, %c0_67, %c0_68] : memref<8x16x128xf32, #tpu.memory_space<vmem>>, vector<1x16x128xf32>
    %196 = vector.shape_cast %195 : vector<1x16x128xf32> to vector<16x128xf32>
    %197 = arith.mulf %193, %196 : vector<16x128xf32>
    %cst_69 = arith.constant dense<0.000000e+00> : vector<128xf32>
    %198 = vector.multi_reduction <add>, %197, %cst_69 [0] : vector<16x128xf32> to vector<128xf32>
    %199 = vector.shape_cast %198 : vector<128xf32> to vector<1x128xf32>
    %c4_i32 = arith.constant 4 : i32
    %200 = arith.addi %139, %c4_i32 : i32
    %201 = arith.index_cast %200 : i32 to index
    %c0_70 = arith.constant 0 : index
    %c0_71 = arith.constant 0 : index
    %202 = vector.load %arg14[%201, %c0_70, %c0_71] : memref<8x16x128xf32, #tpu.memory_space<vmem>>, vector<1x16x128xf32>
    %203 = vector.shape_cast %202 : vector<1x16x128xf32> to vector<16x128xf32>
    %204 = arith.mulf %203, %193 : vector<16x128xf32>
    %205 = arith.index_cast %200 : i32 to index
    %c0_72 = arith.constant 0 : index
    %c0_73 = arith.constant 0 : index
    %206 = vector.load %arg15[%205, %c0_72, %c0_73] : memref<8x16x128xf32, #tpu.memory_space<vmem>>, vector<1x16x128xf32>
    %207 = vector.shape_cast %206 : vector<1x16x128xf32> to vector<16x128xf32>
    %208 = arith.addf %204, %207 : vector<16x128xf32>
    %209 = arith.index_cast %200 : i32 to index
    %c0_74 = arith.constant 0 : index
    %c0_75 = arith.constant 0 : index
    %210 = vector.load %arg16[%209, %c0_74, %c0_75] : memref<8x16x128xf32, #tpu.memory_space<vmem>>, vector<1x16x128xf32>
    %211 = vector.shape_cast %210 : vector<1x16x128xf32> to vector<16x128xf32>
    %212 = arith.mulf %208, %211 : vector<16x128xf32>
    %cst_76 = arith.constant dense<0.000000e+00> : vector<128xf32>
    %213 = vector.multi_reduction <add>, %212, %cst_76 [0] : vector<16x128xf32> to vector<128xf32>
    %214 = vector.shape_cast %213 : vector<128xf32> to vector<1x128xf32>
    %c5_i32 = arith.constant 5 : i32
    %215 = arith.addi %139, %c5_i32 : i32
    %216 = arith.index_cast %215 : i32 to index
    %c0_77 = arith.constant 0 : index
    %c0_78 = arith.constant 0 : index
    %217 = vector.load %arg14[%216, %c0_77, %c0_78] : memref<8x16x128xf32, #tpu.memory_space<vmem>>, vector<1x16x128xf32>
    %218 = vector.shape_cast %217 : vector<1x16x128xf32> to vector<16x128xf32>
    %219 = arith.mulf %218, %208 : vector<16x128xf32>
    %220 = arith.index_cast %215 : i32 to index
    %c0_79 = arith.constant 0 : index
    %c0_80 = arith.constant 0 : index
    %221 = vector.load %arg15[%220, %c0_79, %c0_80] : memref<8x16x128xf32, #tpu.memory_space<vmem>>, vector<1x16x128xf32>
    %222 = vector.shape_cast %221 : vector<1x16x128xf32> to vector<16x128xf32>
    %223 = arith.addf %219, %222 : vector<16x128xf32>
    %224 = arith.index_cast %215 : i32 to index
    %c0_81 = arith.constant 0 : index
    %c0_82 = arith.constant 0 : index
    %225 = vector.load %arg16[%224, %c0_81, %c0_82] : memref<8x16x128xf32, #tpu.memory_space<vmem>>, vector<1x16x128xf32>
    %226 = vector.shape_cast %225 : vector<1x16x128xf32> to vector<16x128xf32>
    %227 = arith.mulf %223, %226 : vector<16x128xf32>
    %cst_83 = arith.constant dense<0.000000e+00> : vector<128xf32>
    %228 = vector.multi_reduction <add>, %227, %cst_83 [0] : vector<16x128xf32> to vector<128xf32>
    %229 = vector.shape_cast %228 : vector<128xf32> to vector<1x128xf32>
    %c6_i32 = arith.constant 6 : i32
    %230 = arith.addi %139, %c6_i32 : i32
    %231 = arith.index_cast %230 : i32 to index
    %c0_84 = arith.constant 0 : index
    %c0_85 = arith.constant 0 : index
    %232 = vector.load %arg14[%231, %c0_84, %c0_85] : memref<8x16x128xf32, #tpu.memory_space<vmem>>, vector<1x16x128xf32>
    %233 = vector.shape_cast %232 : vector<1x16x128xf32> to vector<16x128xf32>
    %234 = arith.mulf %233, %223 : vector<16x128xf32>
    %235 = arith.index_cast %230 : i32 to index
    %c0_86 = arith.constant 0 : index
    %c0_87 = arith.constant 0 : index
    %236 = vector.load %arg15[%235, %c0_86, %c0_87] : memref<8x16x128xf32, #tpu.memory_space<vmem>>, vector<1x16x128xf32>
    %237 = vector.shape_cast %236 : vector<1x16x128xf32> to vector<16x128xf32>
    %238 = arith.addf %234, %237 : vector<16x128xf32>
    %239 = arith.index_cast %230 : i32 to index
    %c0_88 = arith.constant 0 : index
    %c0_89 = arith.constant 0 : index
    %240 = vector.load %arg16[%239, %c0_88, %c0_89] : memref<8x16x128xf32, #tpu.memory_space<vmem>>, vector<1x16x128xf32>
    %241 = vector.shape_cast %240 : vector<1x16x128xf32> to vector<16x128xf32>
    %242 = arith.mulf %238, %241 : vector<16x128xf32>
    %cst_90 = arith.constant dense<0.000000e+00> : vector<128xf32>
    %243 = vector.multi_reduction <add>, %242, %cst_90 [0] : vector<16x128xf32> to vector<128xf32>
    %244 = vector.shape_cast %243 : vector<128xf32> to vector<1x128xf32>
    %c7_i32 = arith.constant 7 : i32
    %245 = arith.addi %139, %c7_i32 : i32
    %246 = arith.index_cast %245 : i32 to index
    %c0_91 = arith.constant 0 : index
    %c0_92 = arith.constant 0 : index
    %247 = vector.load %arg14[%246, %c0_91, %c0_92] : memref<8x16x128xf32, #tpu.memory_space<vmem>>, vector<1x16x128xf32>
    %248 = vector.shape_cast %247 : vector<1x16x128xf32> to vector<16x128xf32>
    %249 = arith.mulf %248, %238 : vector<16x128xf32>
    %250 = arith.index_cast %245 : i32 to index
    %c0_93 = arith.constant 0 : index
    %c0_94 = arith.constant 0 : index
    %251 = vector.load %arg15[%250, %c0_93, %c0_94] : memref<8x16x128xf32, #tpu.memory_space<vmem>>, vector<1x16x128xf32>
    %252 = vector.shape_cast %251 : vector<1x16x128xf32> to vector<16x128xf32>
    %253 = arith.addf %249, %252 : vector<16x128xf32>
    %254 = arith.index_cast %245 : i32 to index
    %c0_95 = arith.constant 0 : index
    %c0_96 = arith.constant 0 : index
    %255 = vector.load %arg16[%254, %c0_95, %c0_96] : memref<8x16x128xf32, #tpu.memory_space<vmem>>, vector<1x16x128xf32>
    %256 = vector.shape_cast %255 : vector<1x16x128xf32> to vector<16x128xf32>
    %257 = arith.mulf %253, %256 : vector<16x128xf32>
    %cst_97 = arith.constant dense<0.000000e+00> : vector<128xf32>
    %258 = vector.multi_reduction <add>, %257, %cst_97 [0] : vector<16x128xf32> to vector<128xf32>
    %259 = vector.shape_cast %258 : vector<128xf32> to vector<1x128xf32>
    %260 = tpu.concatenate %154, %169, %184, %199, %214, %229, %244, %259 in 0 : vector<1x128xf32>, vector<1x128xf32>, vector<1x128xf32>, vector<1x128xf32>, vector<1x128xf32>, vector<1x128xf32>, vector<1x128xf32>, vector<1x128xf32> -> vector<8x128xf32>
    %261 = arith.index_cast %139 : i32 to index
    %c0_98 = arith.constant 0 : index
    %262 = vector.load %arg17[%261, %c0_98] : memref<8x128xf32, #tpu.memory_space<vmem>>, vector<8x128xf32>
    tpu.vector_store %arg17[%261, %c0_98], %260 {strides = array<i32>} : memref<8x128xf32, #tpu.memory_space<vmem>>, vector<8x128xf32>,
    %c1_i32_99 = arith.constant 1 : i32
    %c0_100 = arith.constant 0 : index
    %c0_101 = arith.constant 0 : index
    %263 = vector.load %arg17[%c0_100, %c0_101] : memref<8x128xf32, #tpu.memory_space<vmem>>, vector<8x128xf32>
    %264 = vector.extract_strided_slice %263 {offsets = [0, 0], sizes = [8, 64], strides = [1, 1]} : vector<8x128xf32> to vector<8x64xf32>
    %265 = vector.extract_strided_slice %263 {offsets = [0, 64], sizes = [8, 64], strides = [1, 1]} : vector<8x128xf32> to vector<8x64xf32>
    %266 = tpu.concatenate %264, %265 in 0 : vector<8x64xf32>, vector<8x64xf32> -> vector<16x64xf32>
    %267 = arith.negf %22 : vector<16x64xf32>
    %268 = math.exp %267 : vector<16x64xf32>
    %cst_102 = arith.constant 1.000000e+00 : f32
    %269 = vector.broadcast %cst_102 : f32 to vector<16x64xf32>
    %270 = arith.addf %269, %268 : vector<16x64xf32>
    %271 = arith.divf %269, %270 : vector<16x64xf32>
    %272 = arith.mulf %22, %271 : vector<16x64xf32>
    %273 = arith.mulf %266, %272 : vector<16x64xf32>
    %274 = arith.truncf %273 : vector<16x64xf32> to vector<16x64xbf16>
    %c0_103 = arith.constant 0 : index
    %c0_104 = arith.constant 0 : index
    %275 = vector.load %arg11[%c0_103, %c0_104] : memref<64x32xbf16, #tpu.memory_space<vmem>>, vector<64x32xbf16>
    %cst_105 = arith.constant dense<0.000000e+00> : vector<16x32xf32>
    %276 = tpu.matmul %274, %275, %cst_105 {dimension_numbers = #tpu.dot_dimension_numbers<[1], [0], [0], [1], [0, 0, 1, 1], [], []>} : vector<16x64xbf16>, vector<64x32xbf16>, vector<16x32xf32> -> vector<16x32xf32>
    %c0_106 = arith.constant 0 : index
    %c0_107 = arith.constant 0 : index
    %277 = vector.load %arg12[%c0_106, %c0_107] : memref<1x32xf32, #tpu.memory_space<vmem>>, vector<1x32xf32>
    %278 = vector.broadcast %277 : vector<1x32xf32> to vector<16x32xf32>
    %279 = arith.addf %276, %278 : vector<16x32xf32>
    %280 = arith.addf %279, %1 : vector<16x32xf32>
    %281 = vector.shape_cast %280 : vector<16x32xf32> to vector<2x8x32xf32>
    %c0_108 = arith.constant 0 : index
    %c0_109 = arith.constant 0 : index
    %c0_110 = arith.constant 0 : index
    %282 = vector.load %arg13[%c0_108, %c0_109, %c0_110] : memref<2x8x32xf32, #tpu.memory_space<vmem>>, vector<2x8x32xf32>
    tpu.vector_store %arg13[%c0_108, %c0_109, %c0_110], %281 {strides = array<i32>} : memref<2x8x32xf32, #tpu.memory_space<vmem>>, vector<2x8x32xf32>,
    return
  }
  func.func @transform_0(%arg0: i32) -> (i32, i32, i32) {
    %c0_i32 = arith.constant 0 : i32
    %c0_i32_0 = arith.constant 0 : i32
    %c0_i32_1 = arith.constant 0 : i32
    return %arg0, %c0_i32, %c0_i32_0 : i32, i32, i32
  }
  func.func @transform_1(%arg0: i32) -> (i32, i32) {
    %c0_i32 = arith.constant 0 : i32
    %c0_i32_0 = arith.constant 0 : i32
    %c0_i32_1 = arith.constant 0 : i32
    return %c0_i32, %c0_i32_0 : i32, i32
  }
  func.func @transform_2(%arg0: i32) -> (i32, i32) {
    %c0_i32 = arith.constant 0 : i32
    %c0_i32_0 = arith.constant 0 : i32
    %c0_i32_1 = arith.constant 0 : i32
    return %c0_i32, %c0_i32_0 : i32, i32
  }
  func.func @transform_3(%arg0: i32) -> (i32, i32) {
    %c0_i32 = arith.constant 0 : i32
    %c0_i32_0 = arith.constant 0 : i32
    %c0_i32_1 = arith.constant 0 : i32
    return %c0_i32, %c0_i32_0 : i32, i32
  }
  func.func @transform_4(%arg0: i32) -> (i32, i32) {
    %c0_i32 = arith.constant 0 : i32
    %c0_i32_0 = arith.constant 0 : i32
    %c0_i32_1 = arith.constant 0 : i32
    return %c0_i32, %c0_i32_0 : i32, i32
  }
  func.func @transform_5(%arg0: i32) -> (i32, i32) {
    %c0_i32 = arith.constant 0 : i32
    %c0_i32_0 = arith.constant 0 : i32
    %c0_i32_1 = arith.constant 0 : i32
    return %c0_i32, %c0_i32_0 : i32, i32
  }
  func.func @transform_6(%arg0: i32) -> (i32, i32) {
    %c0_i32 = arith.constant 0 : i32
    %c0_i32_0 = arith.constant 0 : i32
    %c0_i32_1 = arith.constant 0 : i32
    return %c0_i32, %c0_i32_0 : i32, i32
  }
  func.func @transform_7(%arg0: i32) -> (i32, i32) {
    %c0_i32 = arith.constant 0 : i32
    %c0_i32_0 = arith.constant 0 : i32
    %c0_i32_1 = arith.constant 0 : i32
    return %c0_i32, %c0_i32_0 : i32, i32
  }
  func.func @transform_8(%arg0: i32) -> (i32, i32) {
    %c0_i32 = arith.constant 0 : i32
    %c0_i32_0 = arith.constant 0 : i32
    %c0_i32_1 = arith.constant 0 : i32
    return %c0_i32, %c0_i32_0 : i32, i32
  }
  func.func @transform_9(%arg0: i32) -> (i32, i32) {
    %c0_i32 = arith.constant 0 : i32
    %c0_i32_0 = arith.constant 0 : i32
    %c0_i32_1 = arith.constant 0 : i32
    return %c0_i32, %c0_i32_0 : i32, i32
  }
  func.func @transform_10(%arg0: i32) -> (i32, i32) {
    %c0_i32 = arith.constant 0 : i32
    %c0_i32_0 = arith.constant 0 : i32
    %c0_i32_1 = arith.constant 0 : i32
    return %c0_i32, %c0_i32_0 : i32, i32
  }
  func.func @transform_11(%arg0: i32) -> (i32, i32) {
    %c0_i32 = arith.constant 0 : i32
    %c0_i32_0 = arith.constant 0 : i32
    %c0_i32_1 = arith.constant 0 : i32
    return %c0_i32, %c0_i32_0 : i32, i32
  }
  func.func @transform_12(%arg0: i32) -> (i32, i32, i32) {
    %c0_i32 = arith.constant 0 : i32
    %c0_i32_0 = arith.constant 0 : i32
    %c0_i32_1 = arith.constant 0 : i32
    return %arg0, %c0_i32, %c0_i32_0 : i32, i32, i32
  }
}

</mosaic_0001>

<bundles_post_ra>
// kernel: residual_block.1
= control target key start
LH: loop header
LB: loop body
LE: loop exit
PB: predicated region body
PF: predicated region fallthrough
CT: control target
= control target key end

     0   :  { %vm47_vm0 = vcmask 261120   ;;  %s2116_s0 = inlined_call_operand.vmem [shape: f32[2,8,32], index: 0, kind: input, shape index: {}]   ;;  %s2117_s1 = inlined_call_operand.vmem [shape: f32[1,32], index: 1, kind: input, shape index: {}]   ;;  %s2118_s2 = inlined_call_operand.vmem [shape: bf16[32,128], index: 2, kind: input, shape index: {}]   ;;  %s2119_s3 = inlined_call_operand.vmem [shape: f32[1,128], index: 3, kind: input, shape index: {}]   ;;  %s2120_s4 = inlined_call_operand.vmem [shape: f32[3,64], index: 4, kind: input, shape index: {}]   ;;  %s2121_s5 = inlined_call_operand.vmem [shape: f32[1,64], index: 5, kind: input, shape index: {}]   ;;  %s2122_s6 = inlined_call_operand.vmem [shape: bf16[64,36], index: 6, kind: input, shape index: {}]   ;;  %s2123_s7 = inlined_call_operand.vmem [shape: bf16[4,64], index: 7, kind: input, shape index: {}]   ;;  %s2124_s8 = inlined_call_operand.vmem [shape: f32[1,64], index: 8, kind: input, shape index: {}]   ;;  %s2125_s9 = inlined_call_operand.vmem [shape: f32[16,64], index: 9, kind: input, shape index: {}]   ;;  %s2126_s10 = inlined_call_operand.vmem [shape: bf16[64,32], index: 10, kind: input, shape index: {}]   ;;  %s2127_s11 = inlined_call_operand.vmem [shape: f32[1,32], index: 11, kind: input, shape index: {}]   ;;  %s2128_s12 = inlined_call_operand.hbm [shape: f32[2,8,32], index: 12, kind: output, shape index: {}]  }
   0x1   :  { %v43_v0 = vld [vmem:[%s2116_s0] sm:$0xff]  ;;  %v44_v2 = vld [vmem:[%s2116_s0 + $0x8] sm:$0xff] }
   0x2   :  { %v45_v1 = vmul.f32 %v43_v0, %v43_v0 }
   0x3   :  { %17 = vsyncpa [#allocation7], 0  ;;  %v46_v4 = vmul.f32 %v44_v2, %v44_v2  ;;  %v1491_v6 = vmov 32.0   ;;  %v1343_v12 = vld [vmem:[%s2118_s2 + $0x8] sm:$0xff]  ;;  %v1342_v14 = vld [vmem:[%s2118_s2] sm:$0xff]  ;;  %vm138_vm8 = vcmask 1041408  }
   0x4   :  { %v48_v3 = vsel %vm47_vm0, %v45_v1, 0.0  ;;  %1401 = vrcp.f32 %v1491_v6  ;;  %123 = vmatpush.bf16.msra.mxu0 %v1343_v12  ;;  %v1396_v35 = vld [vmem:[%s2117_s1] ss:$0 sm:$0xff]  ;;  %v1347_v41 = vld [vmem:[%s2122_s6 + $0x18] sm:$0xff]  ;;  %v1346_v42 = vld [vmem:[%s2122_s6 + $0x10] sm:$0xff]  ;;  %vm150_vm9 = vcmask 1040384  }
   0x5   :  { %49 = vadd.xlane.f32.xlu0 %v48_v3  ;;  %v51_v5 = vsel %vm47_vm0, %v46_v4, 0.0  ;;  %250 = vmatpush.bf16.msra.mxu1 %v1347_v41  ;;  %v1345_v43 = vld [vmem:[%s2122_s6 + $0x8] sm:$0xff]  ;;  %v1397_v44 = vld [vmem:[%s2119_s3] ss:$0 sm:$0xff]  ;;  %s1492_s23 = smov 64   ;;  %v347_v41 = vlaneseq  ;;  %s1261_s22 = sshll.u32 %s2128_s12, 4  ;;  %s1262_s22 = int_to_ptr.hbm [resolvable:$true] %s1261_s22 }
   0x6   :  { %v1344_v46 = vld [vmem:[%s2122_s6] sm:$0xff]  ;;  %s1494_s6 = smov 128  }
   0x7   :  { %v131_v48 = vld [vmem:[%s2120_s4] sm:$0x7]  ;;  %s1495_s4 = smov 8  }
   0x8   :  { %124 = vmatpush.bf16.msra.mxu0 %v1342_v14  ;;  %v141_v49 = vperm.slane %v131_v48, 0  ;;  %v153_v50 = vperm.slane %v131_v48, 1  ;;  %v158_v53 = vperm.slane %v131_v48, 2  ;;  %v1398_v59 = vld [vmem:[%s2121_s5] ss:$0 sm:$0xff] }
   0x9   :  { %251 = vmatpush.bf16.msra.mxu1 %v1346_v42  ;;  %v1617_v14 = vld [vmem:[%s2125_s9] sm:$0xff]  ;;  %v1629_v42 = vld [vmem:[%s2125_s9 + $0x8] sm:$0xff] }
   0xa   :  { %v1402_v7 = vpop.eup %1401  ;;  %338 = vrot.lane.b32.xlu2 %v1617_v14, %s1492_s23 }
   0xb   :  { %v55_v8 = vmul.f32 32.0, %v1402_v7  ;;  %vm59_vm1 = vweird.f32 %v1402_v7 }
   0xd   :  { %52 = vadd.xlane.f32.xlu0 %v51_v5  ;;  %v56_v9 = vsub.f32 1.0, %v55_v8  ;;  %252 = vmatpush.bf16.msra.mxu1 %v1345_v43  ;;  %v348_v43 = vshrl.u32 %v347_v41, 7 }
   0xf   :  { %v57_v10 = vmul.f32 %v1402_v7, %v56_v9 }
  0x11   :  { %v58_v11 = vadd.f32 %v1402_v7, %v57_v10  ;;  %253 = vmatpush.bf16.msra.mxu1 %v1344_v46  ;;  %v261_v46 = vld [vmem:[%s2123_s7] sm:$0x3] }
  0x12   :  { %340 = vrot.lane.b32.xlu2 %v1629_v42, %s1492_s23  ;;  %v271_v48 = vsel %vm138_vm8, %v261_v46, 0 }
  0x13   :  { %v60_v13 = vsel %vm59_vm1, %v1402_v7, %v58_v11  ;;  %280 = vmatpush.bf16.msra.mxu2 %v271_v48 }
  0x78   :  { %v50_v15 = vpop.xlane.xlu0 %49 }
  0x79   :  { %v61_v16 = vmul.f32 %v60_v13, %v50_v15 }
  0x7b   :  { %v63_v17 = vadd.f32 1e-05, %v61_v16 }
  0x7d   :  { %1403 = vrsqrt.f32 %v63_v17  ;;  %vm71_vm3 = vweird.f32 %v63_v17 }
  0x80   :  { %v53_v18 = vpop.xlane.xlu0 %52 }
  0x81   :  { %v62_v19 = vmul.f32 %v60_v13, %v53_v18 }
  0x83   :  { %v1404_v20 = vpop.eup %1403  ;;  %v64_v21 = vadd.f32 1e-05, %v62_v19 }
  0x84   :  { %v66_v22 = vmul.f32 %v1404_v20, %v63_v17  ;;  %vm72_vm2 = vweird.f32 %v1404_v20 }
  0x85   :  { %1405 = vrsqrt.f32 %v64_v21  ;;  %vm73_vm4 = vmor %vm71_vm3, %vm72_vm2  ;;  %vm81_vm6 = vweird.f32 %v64_v21  ;;  %vm242_vm3 = vcmask 523264  }
  0x86   :  { %v67_v23 = vmul.f32 %v1404_v20, %v66_v22 }
  0x88   :  { %v68_v24 = vmul.f32 0.5, %v67_v23 }
  0x8a   :  { %v69_v25 = vsub.f32 1.5, %v68_v24 }
  0x8b   :  { %v1406_v26 = vpop.eup %1405 }
  0x8c   :  { %v76_v27 = vmul.f32 %v1406_v26, %v64_v21  ;;  %v70_v28 = vmul.f32 %v1404_v20, %v69_v25  ;;  %vm82_vm5 = vweird.f32 %v1406_v26 }
  0x8d   :  { %vm83_vm7 = vmor %vm81_vm6, %vm82_vm5 }
  0x8e   :  { %v77_v29 = vmul.f32 %v1406_v26, %v76_v27  ;;  %v74_v31 = vsel %vm73_vm4, %v1404_v20, %v70_v28  ;;  %vm266_vm4 = vcmask 31744  }
  0x8f   :  { %v85_v34 = vmul.f32 %v74_v31, %v43_v0 }
  0x90   :  { %v78_v30 = vmul.f32 0.5, %v77_v29 }
  0x91   :  { %v91_v38 = vmul.f32 %v1396_v35, %v85_v34 }
  0x92   :  { %v79_v32 = vsub.f32 1.5, %v78_v30 }
  0x94   :  { %v80_v33 = vmul.f32 %v1406_v26, %v79_v32 }
  0x96   :  { %v84_v36 = vsel %vm83_vm7, %v1406_v26, %v80_v33 }
  0x97   :  { %v86_v37 = vmul.f32 %v84_v36, %v44_v2 }
  0x99   :  { %v92_v39 = vmul.f32 %v1396_v35, %v86_v37 }
  0x9b   :  { %v93_v40 = vpack.c.bf16 %v92_v39, %v91_v38 }
  0x9d   :  { %1302 = vmatmul.msk.bf16.vlgmr.msra.gmra.mxu0 %vm47_vm0, %v93_v40 }
 0x11a   :  { %v126_v45 = vpop.f32.mrf.mxu0 }
 0x11b   :  { %v1594_v47 = vadd.f32 %v1397_v44, %v126_v45  ;;  %v1635_v45 = vadd.s32 4, %v348_v43 }
 0x11d   :  { %v134_v51 = vrot.slane %v1594_v47, 6  ;;  %v146_v52 = vrot.slane %v1594_v47, 7  ;;  %v159_v61 = vmul.f32 %v158_v53, %v1594_v47  ;;  %1359 = vset.pattern.permute.xlu2 %v1635_v45  ;;  %1357 = vset.pattern.permute.xlu0 %v1635_v45 }
 0x11f   :  { %v139_v54 = vsel %vm138_vm8, 0.0, %v134_v51  ;;  %v151_v55 = vsel %vm150_vm9, 0.0, %v146_v52 }
 0x120   :  { %v142_v56 = vmul.f32 %v141_v49, %v139_v54  ;;  %v154_v57 = vmul.f32 %v153_v50, %v151_v55 }
 0x122   :  { %v128_v58 = vpop.f32.mrf.mxu0  ;;  %v156_v60 = vadd.f32 %v154_v57, %v142_v56 }
 0x123   :  { %v1607_v62 = vadd.f32 %v1397_v44, %v128_v58  ;;  %v1633_v44 = vadd.s32 12, %v348_v43 }
 0x124   :  { %v161_v63 = vadd.f32 %v159_v61, %v156_v60 }
 0x125   :  { %v135_v0 = vrot.slane %v1607_v62, 6  ;;  %v147_v1 = vrot.slane %v1607_v62, 7  ;;  %v160_v9 = vmul.f32 %v158_v53, %v1607_v62  ;;  %1358 = vset.pattern.permute.xlu1 %v1633_v44 }
 0x126   :  { %v167_v2 = vadd.f32 %v1398_v59, %v161_v63  ;;  %v1681_v63 = vadd.s32 20, %v348_v43 }
 0x127   :  { %v140_v3 = vsel %vm138_vm8, 0.0, %v135_v0  ;;  %v152_v4 = vsel %vm150_vm9, 0.0, %v147_v1  ;;  %v1691_v1 = vadd.s32 28, %v348_v43 }
 0x128   :  { %v143_v5 = vmul.f32 %v141_v49, %v140_v3  ;;  %v155_v6 = vmul.f32 %v153_v50, %v152_v4  ;;  %v1303_v7 = vmul.f32 -1.442695, %v167_v2  ;;  %v1324_v4 = vmul.f32 -1.442695, %v1607_v62 }
 0x12a   :  { %v157_v8 = vadd.f32 %v155_v6, %v143_v5  ;;  %1407 = vpow2.f32 %v1303_v7 }
 0x12c   :  { %v162_v10 = vadd.f32 %v160_v9, %v157_v8 }
 0x12e   :  { %v168_v11 = vadd.f32 %v1398_v59, %v162_v10 }
 0x130   :  { %v1408_v12 = vpop.eup %1407  ;;  %v1304_v13 = vmul.f32 -1.442695, %v168_v11 }
 0x131   :  { %v175_v15 = vadd.f32 1.0, %v1408_v12 }
 0x132   :  { %1409 = vpow2.f32 %v1304_v13 }
 0x133   :  { %1411 = vrcp.f32 %v175_v15  ;;  %v188_v25 = vand.u32 2147483648, %v175_v15  ;;  %vm182_vm11 = vweird.f32 %v175_v15  ;;  %v186_v27 = vand.u32 2147483647, %v175_v15 }
 0x135   :  { %v189_v32 = vor.u32 1.1754944e-38, %v188_v25  ;;  %vm187_vm15 = vcmp.eq.f32.partialorder %v186_v27, 8.507059e+37 }
 0x138   :  { %v1410_v16 = vpop.eup %1409 }
 0x139   :  { %v1412_v17 = vpop.eup %1411  ;;  %v176_v18 = vadd.f32 1.0, %v1410_v16  ;;  %v1399_v16 = vld [vmem:[%s2124_s8] ss:$0 sm:$0xff] }
 0x13a   :  { %v178_v19 = vmul.f32 %v1412_v17, %v175_v15  ;;  %vm183_vm10 = vweird.f32 %v1412_v17 }
 0x13b   :  { %1413 = vrcp.f32 %v176_v18  ;;  %v203_v28 = vand.u32 2147483648, %v176_v18  ;;  %vm184_vm12 = vmor %vm182_vm11, %vm183_vm10  ;;  %v201_v30 = vand.u32 2147483647, %v176_v18  ;;  %vm197_vm14 = vweird.f32 %v176_v18 }
 0x13c   :  { %v179_v20 = vsub.f32 1.0, %v178_v19  ;;  %1415 = vpow2.f32 %v1324_v4 }
 0x13d   :  { %v204_v34 = vor.u32 1.1754944e-38, %v203_v28  ;;  %vm202_vm2 = vcmp.eq.f32.partialorder %v201_v30, 8.507059e+37 }
 0x13e   :  { %v180_v21 = vmul.f32 %v1412_v17, %v179_v20 }
 0x140   :  { %v181_v24 = vadd.f32 %v1412_v17, %v180_v21 }
 0x141   :  { %v1414_v22 = vpop.eup %1413 }
 0x142   :  { %v193_v23 = vmul.f32 %v1414_v22, %v176_v18  ;;  %vm198_vm13 = vweird.f32 %v1414_v22  ;;  %v185_v31 = vsel %vm184_vm12, %v1412_v17, %v181_v24  ;;  %v1416_v5 = vpop.eup %1415 }
 0x143   :  { %vm199_vm1 = vmor %vm197_vm14, %vm198_vm13  ;;  %v190_v35 = vsel %vm187_vm15, %v189_v32, %v185_v31  ;;  %v1154_v6 = vadd.f32 1.0, %v1416_v5 }
 0x144   :  { %v194_v26 = vsub.f32 1.0, %v193_v23  ;;  %v1621_v39 = vmul.f32 %v190_v35, %v167_v2 }
 0x145   :  { %1417 = vrcp.f32 %v1154_v6  ;;  %v1181_v13 = vand.u32 2147483648, %v1154_v6  ;;  %vm1175_vm6 = vweird.f32 %v1154_v6  ;;  %v1179_v15 = vand.u32 2147483647, %v1154_v6 }
 0x146   :  { %v195_v29 = vmul.f32 %v1414_v22, %v194_v26 }
 0x147   :  { %v1182_v18 = vor.u32 1.1754944e-38, %v1181_v13  ;;  %vm1180_vm10 = vcmp.eq.f32.partialorder %v1179_v15, 8.507059e+37 }
 0x148   :  { %v196_v33 = vadd.f32 %v1414_v22, %v195_v29 }
 0x14a   :  { %v200_v36 = vsel %vm199_vm1, %v1414_v22, %v196_v33 }
 0x14b   :  { %v205_v37 = vsel %vm202_vm2, %v204_v34, %v200_v36  ;;  %v1418_v7 = vpop.eup %1417 }
 0x14c   :  { %v208_v38 = vmul.f32 %v205_v37, %v168_v11  ;;  %v1171_v8 = vmul.f32 %v1418_v7, %v1154_v6  ;;  %vm1176_vm5 = vweird.f32 %v1418_v7 }
 0x14d   :  { %vm1177_vm7 = vmor %vm1175_vm6, %vm1176_vm5  ;;  %vm1131_vm5 = vcmask 1042432   ;;  %vm1133_vm6 = vcmask 1043456  }
 0x14e   :  { %329 = vrot.lane.b32.xlu1 %v208_v38, %s1492_s23  ;;  %v209_v40 = vpack.c.bf16 %v208_v38, %v1621_v39  ;;  %v1172_v9 = vsub.f32 1.0, %v1171_v8 }
 0x150   :  { %1321 = vmatmul.msk.bf16.vlgmr.msra.gmra.mxu1 %vm242_vm3, %v209_v40  ;;  %v1173_v11 = vmul.f32 %v1418_v7, %v1172_v9 }
 0x152   :  { %v1174_v12 = vadd.f32 %v1418_v7, %v1173_v11 }
 0x154   :  { %v1178_v17 = vsel %vm1177_vm7, %v1418_v7, %v1174_v12  ;;  %vm1139_vm7 = vcmask 1046528  }
 0x155   :  { %v1183_v20 = vsel %vm1180_vm10, %v1182_v18, %v1178_v17 }
 0x156   :  { %v1186_v22 = vmul.f32 %v1183_v20, %v1607_v62  ;;  %v1743_v62 = vpop.permute.xlu2 %338  ;;  %v1323_v20 = vmul.f32 -1.442695, %v1594_v47 }
 0x15e   :  { %v1752_v28 = vpop.permute.xlu2 %340 }
 0x1c0   :  { %v1731_v23 = vpop.permute.xlu1 %329 }
 0x1cd   :  { %v255_v49 = vpop.f32.mrf.mxu1 }
 0x1ce   :  { %v359_v50 = vperm.slane %v255_v49, 1  ;;  %v1644_v51 = vperm.slane %v255_v49, 0  ;;  %v372_v53 = vperm.slane %v255_v49, 2  ;;  %v385_v55 = vperm.slane %v255_v49, 3 }
 0x1cf   :  { %v1652_v56 = vperm.slane %v255_v49, 5  ;;  %v1655_v57 = vperm.slane %v255_v49, 4  ;;  %v1668_v59 = vperm.slane %v255_v49, 6  ;;  %v1676_v61 = vperm.slane %v255_v49, 7 }
 0x1d0   :  { %364 = vperm.xlu2 %1359, %v359_v50   ;;  %357 = vperm.xlu1 %1358, %v1644_v51  }
 0x1d1   :  { %351 = vperm.xlu0 %1357, %v1644_v51  }
 0x1d5   :  { %v1648_v52 = vpop.f32.mrf.mxu1 }
 0x1d6   :  { %v260_v54 = vpack.c.bf16 %v1648_v52, %v255_v49  ;;  %v1660_v58 = vperm.slane %v1648_v52, 0  ;;  %v1671_v60 = vperm.slane %v1648_v52, 2  ;;  %v1684_v0 = vperm.slane %v1648_v52, 5 }
 0x1d7   :  { %v1694_v2 = vperm.slane %v1648_v52, 1  ;;  %v1700_v3 = vperm.slane %v1648_v52, 3  ;;  %v1714_v10 = vperm.slane %v1648_v52, 4  ;;  %v1746_v26 = vperm.slane %v1648_v52, 6 }
 0x1d8   :  { %377 = vperm.xlu2 %1359, %v372_v53   ;;  %370 = vperm.xlu1 %1358, %v359_v50   ;;  %v1783_v49 = vperm.slane %v1648_v52, 7 }
 0x1d9   :  { %1360 = vset.pattern.permute.xlu0 %v1633_v44  ;;  %1322 = vmatmul.msk.bf16.vlgmr.msra.gmra.mxu2 %vm266_vm4, %v260_v54 }
 0x1e0   :  { %390 = vperm.xlu2 %1359, %v385_v55   ;;  %383 = vperm.xlu1 %1358, %v372_v53  }
 0x1e1   :  { %422 = vperm.xlu0 %1360, %v1652_v56  }
 0x1e8   :  { %403 = vperm.xlu2 %1359, %v1655_v57   ;;  %396 = vperm.xlu1 %1358, %v385_v55  }
 0x1e9   :  { %1371 = vset.pattern.permute.xlu0 %v1635_v45 }
 0x1f0   :  { %416 = vperm.xlu2 %1359, %v1652_v56   ;;  %409 = vperm.xlu1 %1358, %v1655_v57  }
 0x1f1   :  { %455 = vperm.xlu0 %1371, %v1660_v58  }
 0x1f8   :  { %1362 = vset.pattern.permute.xlu2 %v1633_v44  ;;  %1361 = vset.pattern.permute.xlu1 %v1635_v45 }
 0x1f9   :  { %1374 = vset.pattern.permute.xlu0 %v1633_v44 }
 0x200   :  { %435 = vperm.xlu2 %1362, %v1668_v59   ;;  %429 = vperm.xlu1 %1361, %v1668_v59  }
 0x201   :  { %487 = vperm.xlu0 %1374, %v1671_v60  }
 0x208   :  { %448 = vperm.xlu2 %1362, %v1676_v61   ;;  %442 = vperm.xlu1 %1361, %v1676_v61  }
 0x209   :  { %1377 = vset.pattern.permute.xlu0 %v1635_v45 }
 0x210   :  { %1363 = vset.pattern.permute.xlu2 %v1681_v63  ;;  %1364 = vset.pattern.permute.xlu1 %v1681_v63 }
 0x211   :  { %520 = vperm.xlu0 %1377, %v1684_v0  }
 0x218   :  { %574 = vperm.xlu2 %1363, %v1644_v51   ;;  %586 = vperm.xlu1 %1364, %v359_v50  }
 0x219   :  { %1382 = vset.pattern.permute.xlu0 %v1681_v63 }
 0x220   :  { %1365 = vset.pattern.permute.xlu2 %v1691_v1  ;;  %1367 = vset.pattern.permute.xlu1 %v1691_v1 }
 0x221   :  { %682 = vperm.xlu0 %1382, %v1694_v2  }
 0x228   :  { %592 = vperm.xlu2 %1365, %v359_v50   ;;  %604 = vperm.xlu1 %1367, %v372_v53  }
 0x229   :  { %706 = vperm.xlu0 %1382, %v1700_v3  }
 0x22a   :  { %v1758_v30 = vpop.permute.xlu2 %364 }
 0x230   :  { %1366 = vset.pattern.permute.xlu2 %v1681_v63  ;;  %1368 = vset.pattern.permute.xlu1 %v1681_v63 }
 0x231   :  { %646 = vperm.xlu0 %1382, %v1668_v59  }
 0x232   :  { %v1764_v34 = vpop.permute.xlu2 %377 }
 0x238   :  { %598 = vperm.xlu2 %1366, %v372_v53   ;;  %610 = vperm.xlu1 %1368, %v385_v55  }
 0x239   :  { %1391 = vset.pattern.permute.xlu0 %v1691_v1 }
 0x23a   :  { %v1772_v38 = vpop.permute.xlu2 %390 }
 0x240   :  { %1369 = vset.pattern.permute.xlu2 %v1691_v1  ;;  %1372 = vset.pattern.permute.xlu1 %v1633_v44 }
 0x241   :  { %580 = vperm.xlu0 %1391, %v1644_v51  }
 0x242   :  { %v1735_v24 = vpop.permute.xlu1 %357  ;;  %v1778_v46 = vpop.permute.xlu2 %403 }
 0x248   :  { %616 = vperm.xlu2 %1369, %v385_v55   ;;  %461 = vperm.xlu1 %1372, %v1660_v58  }
 0x249   :  { %700 = vperm.xlu0 %1391, %v1671_v60  }
 0x24a   :  { %v1739_v25 = vpop.permute.xlu1 %370  ;;  %v1787_v51 = vpop.permute.xlu2 %416 }
 0x250   :  { %1370 = vset.pattern.permute.xlu2 %v1681_v63  ;;  %474 = vperm.xlu1 %1372, %v1694_v2  }
 0x251   :  { %724 = vperm.xlu0 %1391, %v1714_v10  }
 0x252   :  { %v1748_v27 = vpop.permute.xlu1 %383 }
 0x258   :  { %622 = vperm.xlu2 %1370, %v1655_v57   ;;  %1375 = vset.pattern.permute.xlu1 %v1635_v45 }
 0x259   :  { %664 = vperm.xlu0 %1391, %v1676_v61  }
 0x25a   :  { %v1756_v29 = vpop.permute.xlu1 %396 }
 0x25c   :  { %v282_v19 = vpop.f32.mrf.mxu2 }
 0x25d   :  { %v1725_v21 = vadd.f32 %v1399_v16, %v282_v19 }
 0x25f   :  { %vm289_vm4 = vcmp.ne.f32.partialorder %v1725_v21, %v1725_v21 }
 0x260   :  { %1373 = vset.pattern.permute.xlu2 %v1635_v45  ;;  %494 = vperm.xlu1 %1375, %v1700_v3  }
 0x261   :  { %1191 = vrot.lane.b32.xlu0 %v1186_v22, %s1492_s23 }
 0x262   :  { %v1762_v32 = vpop.permute.xlu1 %409 }
 0x264   :  { %v284_v31 = vpop.f32.mrf.mxu2 }
 0x265   :  { %v285_v33 = vadd.f32 %v1399_v16, %v284_v31  ;;  %v1821_v16 = vpop.permute.xlu0 %351 }
 0x267   :  { %v294_v35 = vand.u32 2147483647, %v285_v33  ;;  %v288_v7 = vmax.f32 %v285_v33, 0.0  ;;  %vm290_vm12 = vcmp.ne.f32.partialorder %v285_v33, %v285_v33 }
 0x268   :  { %468 = vperm.xlu2 %1373, %v1694_v2   ;;  %507 = vperm.xlu1 %1375, %v1714_v10  }
 0x269   :  { %v296_v37 = vsub.f32 0.0, %v294_v35 }
 0x26b   :  { %v299_v40 = vmul.f32 1.442695, %v296_v37 }
 0x26d   :  { %1419 = vpow2.f32 %v299_v40 }
 0x270   :  { %481 = vperm.xlu2 %1373, %v1671_v60   ;;  %1378 = vset.pattern.permute.xlu1 %v1633_v44 }
 0x272   :  { %v1768_v36 = vpop.permute.xlu1 %429 }
 0x273   :  { %v1420_v43 = vpop.eup %1419 }
 0x274   :  { %v310_v50 = vadd.f32 1.0, %v1420_v43  ;;  %v313_v54 = vmul.f32 -0.5, %v1420_v43 }
 0x276   :  { %1421 = vlog2.f32 %v310_v50  ;;  %v314_v55 = vadd.f32 1.0, %v313_v54  ;;  %v293_v54 = vand.u32 2147483647, %v1725_v21 }
 0x277   :  { %1423 = vpow2.f32 %v1323_v20 }
 0x278   :  { %1376 = vset.pattern.permute.xlu2 %v1633_v44  ;;  %526 = vperm.xlu1 %1378, %v1684_v0   ;;  %v315_v5 = vmul.f32 %v1420_v43, %v314_v55  ;;  %v295_v55 = vsub.f32 0.0, %v293_v54 }
 0x27a   :  { %v1774_v41 = vpop.permute.xlu1 %442 }
 0x280   :  { %500 = vperm.xlu2 %1376, %v1700_v3   ;;  %539 = vperm.xlu1 %1378, %v1746_v26  }
 0x288   :  { %513 = vperm.xlu2 %1376, %v1714_v10   ;;  %1380 = vset.pattern.permute.xlu1 %v1681_v63 }
 0x28a   :  { %v1780_v48 = vpop.permute.xlu1 %586 }
 0x290   :  { %1379 = vset.pattern.permute.xlu2 %v1635_v45  ;;  %670 = vperm.xlu1 %1380, %v1660_v58  }
 0x298   :  { %533 = vperm.xlu2 %1379, %v1746_v26   ;;  %1383 = vset.pattern.permute.xlu1 %v1691_v1 }
 0x29a   :  { %v1789_v53 = vpop.permute.xlu1 %604 }
 0x2a0   :  { %1381 = vset.pattern.permute.xlu2 %v1691_v1  ;;  %688 = vperm.xlu1 %1383, %v1694_v2   ;;  %v1793_v2 = vpop.permute.xlu2 %435 }
 0x2a8   :  { %676 = vperm.xlu2 %1381, %v1660_v58   ;;  %1385 = vset.pattern.permute.xlu1 %v1635_v45  ;;  %v1422_v45 = vpop.eup %1421  ;;  %v316_v58 = vand.u32 2147483647, %v1420_v43  ;;  %v1801_v11 = vpop.permute.xlu2 %448 }
 0x2a9   :  { %v312_v52 = vmul.f32 0.6931472, %v1422_v45 }
 0x2aa   :  { %v1795_v4 = vpop.permute.xlu1 %610  ;;  %vm317_vm11 = vcmp.lt.f32.partialorder %v316_v58, 0.0004427343 }
 0x2ab   :  { %v318_v6 = vsel %vm317_vm11, %v315_v5, %v312_v52  ;;  %v297_v52 = vmul.f32 1.442695, %v295_v55 }
 0x2ac   :  { %v320_v8 = vadd.f32 %v318_v6, %v288_v7 }
 0x2ae   :  { %v322_v9 = vsel %vm290_vm12, %v285_v33, %v320_v8  ;;  %v1424_v33 = vpop.eup %1423 }
 0x2af   :  { %v1153_v35 = vadd.f32 1.0, %v1424_v33 }
 0x2b0   :  { %1384 = vset.pattern.permute.xlu2 %v1681_v63  ;;  %546 = vperm.xlu1 %1385, %v1783_v49   ;;  %v1805_v12 = vpop.permute.xlu2 %574 }
 0x2b1   :  { %1425 = vrcp.f32 %v1153_v35  ;;  %vm1160_vm14 = vweird.f32 %v1153_v35  ;;  %v1164_v7 = vand.u32 2147483647, %v1153_v35 }
 0x2b2   :  { %1427 = vpow2.f32 %v297_v52 }
 0x2b3   :  { %vm1165_vm1 = vcmp.eq.f32.partialorder %v1164_v7, 8.507059e+37 }
 0x2b7   :  { %v1426_v40 = vpop.eup %1425 }
 0x2b8   :  { %694 = vperm.xlu2 %1384, %v1671_v60   ;;  %1387 = vset.pattern.permute.xlu1 %v1691_v1  ;;  %v1156_v50 = vmul.f32 %v1426_v40, %v1153_v35  ;;  %vm1161_vm13 = vweird.f32 %v1426_v40  ;;  %v1428_v20 = vpop.eup %1427 }
 0x2b9   :  { %vm1162_vm15 = vmor %vm1160_vm14, %vm1161_vm13  ;;  %v301_v54 = vadd.f32 1.0, %v1428_v20 }
 0x2ba   :  { %v1799_v60 = vpop.permute.xlu1 %461  ;;  %v1157_v45 = vsub.f32 1.0, %v1156_v50 }
 0x2bb   :  { %1429 = vlog2.f32 %v301_v54  ;;  %v332_v54 = vsel %vm242_vm3, %v1621_v39, %v1731_v23 }
 0x2c0   :  { %1386 = vset.pattern.permute.xlu2 %v1633_v44  ;;  %712 = vperm.xlu1 %1387, %v1700_v3   ;;  %v1811_v44 = vpop.permute.xlu2 %592 }
 0x2c2   :  { %v1807_v13 = vpop.permute.xlu1 %474 }
 0x2c8   :  { %552 = vperm.xlu2 %1386, %v1783_v49   ;;  %324 = vrot.lane.b32.xlu1 %v322_v9, %s1492_s23  ;;  %v1817_v15 = vpop.permute.xlu2 %598 }
 0x2d0   :  { %1388 = vset.pattern.permute.xlu2 %v1681_v63  ;;  %628 = vperm.xlu1 %1387, %v1655_v57   ;;  %v1825_v18 = vpop.permute.xlu2 %616  ;;  %v423_v57 = vpop.permute.xlu0 %422 }
 0x2d1   :  { %2129 = vst [vmem:[#allocation9_spill] sm:$0xff] %v1825_v18 }
 0x2d2   :  { %v1813_v3 = vpop.permute.xlu1 %494 }
 0x2d8   :  { %718 = vperm.xlu2 %1388, %v1714_v10   ;;  %1389 = vset.pattern.permute.xlu1 %v1681_v63  ;;  %v1833_v22 = vpop.permute.xlu2 %622  ;;  %v1837_v31 = vpop.permute.xlu0 %455 }
 0x2da   :  { %v1823_v17 = vpop.permute.xlu1 %507 }
 0x2e0   :  { %1390 = vset.pattern.permute.xlu2 %v1691_v1  ;;  %634 = vperm.xlu1 %1389, %v1652_v56   ;;  %v1843_v37 = vpop.permute.xlu0 %487 }
 0x2e1   :  { %v1889_v39 = vsel %vm242_vm3, %v1748_v27, %v1843_v37 }
 0x2e8   :  { %640 = vperm.xlu2 %1390, %v1652_v56   ;;  %730 = vperm.xlu1 %1389, %v1684_v0   ;;  %v1839_v56 = vpop.permute.xlu2 %468  ;;  %v521_v43 = vpop.permute.xlu0 %520 }
 0x2ea   :  { %v527_v10 = vpop.permute.xlu1 %526 }
 0x2eb   :  { %v1830_v19 = vsel %vm242_vm3, %v423_v57, %v527_v10 }
 0x2ec   :  { %2130 = vst [vmem:[#allocation10_spill] sm:$0xff] %v1830_v19 }
 0x2f0   :  { %736 = vperm.xlu2 %1390, %v1684_v0   ;;  %1392 = vset.pattern.permute.xlu1 %v1691_v1  ;;  %v1847_v0 = vpop.permute.xlu2 %481  ;;  %v683_v58 = vpop.permute.xlu0 %682 }
 0x2f1   :  { %v1898_v23 = vsel %vm242_vm3, %v1780_v48, %v683_v58  ;;  %v1921_v48 = vsel %vm242_vm3, %v1739_v25, %v1807_v13  ;;  %v1941_v25 = vsel %vm242_vm3, %v1778_v46, %v1823_v17 }
 0x2f2   :  { %v1856_v5 = vpop.permute.xlu1 %539 }
 0x2f8   :  { %1393 = vset.pattern.permute.xlu2 %v1681_v63  ;;  %652 = vperm.xlu1 %1392, %v1668_v59   ;;  %v1852_v59 = vpop.permute.xlu2 %500  ;;  %v707_v9 = vpop.permute.xlu0 %706 }
 0x300   :  { %742 = vperm.xlu2 %1393, %v1746_v26   ;;  %748 = vperm.xlu1 %1392, %v1746_v26   ;;  %v1158_v26 = vmul.f32 %v1426_v40, %v1157_v45  ;;  %v514_v6 = vpop.permute.xlu2 %513  ;;  %v1861_v55 = vpop.permute.xlu0 %646 }
 0x301   :  { %2131 = vst [vmem:[#allocation11_spill] sm:$0xff] %v1861_v55 }
 0x308   :  { %658 = vperm.xlu2 %1393, %v1676_v61   ;;  %1394 = vset.pattern.permute.xlu1 %v1681_v63  ;;  %v1159_v61 = vadd.f32 %v1426_v40, %v1158_v26  ;;  %v1166_v63 = vand.u32 2147483648, %v1153_v35  ;;  %v534_v33 = vpop.permute.xlu2 %533  ;;  %v304_v26 = vmul.f32 -0.5, %v1428_v20 }
 0x30a   :  { %v1163_v8 = vsel %vm1162_vm15, %v1426_v40, %v1159_v61  ;;  %v1167_v57 = vor.u32 1.1754944e-38, %v1166_v63  ;;  %v305_v52 = vadd.f32 1.0, %v304_v26  ;;  %v581_v61 = vpop.permute.xlu0 %580  ;;  %v307_v63 = vand.u32 2147483647, %v1428_v20 }
 0x30b   :  { %v1872_v26 = vsel %vm242_vm3, %v1617_v14, %v1743_v62  ;;  %v1893_v14 = vsel %vm242_vm3, %v1787_v51, %v521_v43  ;;  %v1902_v62 = vsel %vm242_vm3, %v1795_v4, %v707_v9  ;;  %v1926_v51 = vsel %vm242_vm3, %v1764_v34, %v1847_v0 }
 0x30c   :  { %v1168_v10 = vsel %vm1165_vm1, %v1167_v57, %v1163_v8  ;;  %v306_v57 = vmul.f32 %v1428_v20, %v305_v52  ;;  %vm308_vm2 = vcmp.lt.f32.partialorder %v307_v63, 0.0004427343  ;;  %v1877_v20 = vsel %vm242_vm3, %v1629_v42, %v1752_v28  ;;  %v2132_v63 = vld [vmem:[#allocation9_spill] sm:$0xff] }
 0x30d   :  { %v1185_v50 = vmul.f32 %v1168_v10, %v1594_v47  ;;  %v287_v47 = vmax.f32 %v1725_v21, 0.0  ;;  %v1907_v28 = vsel %vm242_vm3, %v1735_v24, %v1799_v60  ;;  %v1931_v24 = vsel %vm242_vm3, %v1772_v38, %v1813_v3 }
 0x30e   :  { %v1949_v34 = vsel %vm242_vm3, %v1768_v36, %v534_v33  ;;  %v1954_v4 = vsel %vm242_vm3, %v1793_v2, %v1856_v5 }
 0x310   :  { %1395 = vset.pattern.permute.xlu2 %v1691_v1  ;;  %754 = vperm.xlu1 %1394, %v1783_v49   ;;  %v671_v1 = vpop.permute.xlu1 %670  ;;  %v677_v35 = vpop.permute.xlu2 %676 }
 0x311   :  { %v1961_v46 = vsel %vm242_vm3, %v1805_v12, %v671_v1 }
 0x312   :  { %v701_v55 = vpop.permute.xlu0 %700 }
 0x313   :  { %v1911_v27 = vsel %vm242_vm3, %v1789_v53, %v701_v55  ;;  %v1945_v53 = vsel %vm242_vm3, %v1762_v32, %v514_v6 }
 0x318   :  { %760 = vperm.xlu2 %1395, %v1783_v49   ;;  %v689_v45 = vpop.permute.xlu1 %688  ;;  %v1430_v49 = vpop.eup %1429 }
 0x319   :  { %v695_v7 = vpop.permute.xlu2 %694  ;;  %v303_v8 = vmul.f32 0.6931472, %v1430_v49 }
 0x31a   :  { %v1968_v36 = vsel %vm242_vm3, %v1817_v15, %v695_v7 }
 0x31b   :  { %v309_v19 = vsel %vm308_vm2, %v306_v57, %v303_v8 }
 0x320   :  { %1189 = vrot.lane.b32.xlu2 %v1185_v50, %s1492_s23  ;;  %v319_v50 = vadd.f32 %v309_v19, %v287_v47  ;;  %v1884_v19 = vsel %vm242_vm3, %v1821_v16, %v1837_v31  ;;  %v1975_v16 = vsel %vm242_vm3, %v1811_v44, %v689_v45 }
 0x322   :  { %v547_v40 = vpop.permute.xlu1 %546  ;;  %v553_v18 = vpop.permute.xlu2 %552  ;;  %v321_v42 = vsel %vm289_vm4, %v1725_v21, %v319_v50  ;;  %v1916_v21 = vsel %vm242_vm3, %v1758_v30, %v1839_v56  ;;  %v1936_v30 = vsel %vm242_vm3, %v1756_v29, %v1852_v59  ;;  %v1957_v29 = vsel %vm242_vm3, %v581_v61, %v677_v35 }
 0x323   :  { %v1986_v43 = vsel %vm242_vm3, %v1801_v11, %v553_v18  ;;  %v1990_v44 = vsel %vm242_vm3, %v1774_v41, %v547_v40 }
 0x332   :  { %v1864_v10 = vpop.permute.xlu1 %712  ;;  %v719_v60 = vpop.permute.xlu2 %718 }
 0x333   :  { %v2004_v61 = vsel %vm242_vm3, %v1833_v22, %v719_v60  ;;  %v2009_v7 = vsel %vm242_vm3, %v2132_v63, %v1864_v10 }
 0x33a   :  { %v325_v38 = vpop.permute.xlu1 %324 }
 0x33b   :  { %v1964_v32 = vsel %vm242_vm3, %v321_v42, %v325_v38 }
 0x33c   :  { %v779_v13 = vrot.slane %v1964_v32, 1  ;;  %v780_v2 = vrot.slane %v1964_v32, 2  ;;  %v786_v3 = vperm.slane %v1964_v32, 0  ;;  %v1978_v12 = vmul.f32 %v332_v54, %v1964_v32 }
 0x33d   :  { %v781_v17 = vrot.slane %v1964_v32, 3  ;;  %v782_v31 = vrot.slane %v1964_v32, 4  ;;  %v783_v57 = vrot.slane %v1964_v32, 5  ;;  %v784_v47 = vrot.slane %v1964_v32, 6 }
 0x33e   :  { %v787_v15 = vperm.slane %v779_v13, 0  ;;  %v788_v56 = vperm.slane %v780_v2, 0  ;;  %v802_v37 = vmul.f32 %v786_v3, %v1872_v26  ;;  %v803_v0 = vmul.f32 %v786_v3, %v1877_v20 }
 0x33f   :  { %v789_v59 = vperm.slane %v781_v17, 0  ;;  %v790_v58 = vperm.slane %v782_v31, 0  ;;  %v867_v41 = vrot.slane %v1978_v12, 1  ;;  %v868_v35 = vrot.slane %v1978_v12, 2 }
 0x340   :  { %v804_v5 = vmul.f32 %v787_v15, %v1872_v26  ;;  %v805_v6 = vmul.f32 %v787_v15, %v1877_v20  ;;  %v806_v9 = vmul.f32 %v788_v56, %v1872_v26  ;;  %v818_v1 = vmul.f32 1.442695, %v802_v37 }
 0x341   :  { %v820_v33 = vmul.f32 1.442695, %v803_v0  ;;  %v807_v45 = vmul.f32 %v788_v56, %v1877_v20  ;;  %v808_v55 = vmul.f32 %v789_v59, %v1872_v26  ;;  %v809_v11 = vmul.f32 %v789_v59, %v1877_v20 }
 0x342   :  { %1431 = vpow2.f32 %v818_v1  ;;  %v822_v18 = vmul.f32 1.442695, %v804_v5  ;;  %v824_v49 = vmul.f32 1.442695, %v805_v6  ;;  %v810_v40 = vmul.f32 %v790_v58, %v1872_v26  ;;  %v641_v8 = vpop.permute.xlu2 %640 }
 0x343   :  { %v811_v52 = vmul.f32 %v790_v58, %v1877_v20  ;;  %1433 = vpow2.f32 %v820_v33  ;;  %v826_v50 = vmul.f32 1.442695, %v806_v9  ;;  %v828_v54 = vmul.f32 1.442695, %v807_v45  ;;  %v629_v9 = vpop.permute.xlu1 %628 }
 0x344   :  { %1435 = vpow2.f32 %v822_v18  ;;  %v869_v42 = vrot.slane %v1978_v12, 3  ;;  %v830_v38 = vmul.f32 1.442695, %v808_v55  ;;  %v870_v13 = vrot.slane %v1978_v12, 4 }
 0x345   :  { %v874_v22 = vperm.slane %v1978_v12, 0  ;;  %v875_v60 = vperm.slane %v867_v41, 0  ;;  %1437 = vpow2.f32 %v824_v49  ;;  %v832_v2 = vmul.f32 1.442695, %v809_v11 }
 0x346   :  { %v876_v10 = vperm.slane %v868_v35, 0  ;;  %v877_v3 = vperm.slane %v869_v42, 0  ;;  %v834_v31 = vmul.f32 1.442695, %v810_v40  ;;  %v878_v15 = vperm.slane %v870_v13, 0 }
 0x347   :  { %v891_v56 = vmul.f32 %v874_v22, %v1907_v28  ;;  %v791_v37 = vperm.slane %v783_v57, 0  ;;  %v836_v59 = vmul.f32 1.442695, %v811_v52  ;;  %v892_v58 = vmul.f32 %v875_v60, %v1916_v21  ;;  %v725_v52 = vpop.permute.xlu0 %724 }
 0x348   :  { %v1432_v17 = vpop.eup %1431  ;;  %v893_v5 = vmul.f32 %v875_v60, %v1921_v48  ;;  %v894_v6 = vmul.f32 %v876_v10, %v1926_v51  ;;  %1439 = vpow2.f32 %v826_v50  ;;  %v895_v1 = vmul.f32 %v876_v10, %v1889_v39  ;;  %v2133_v60 = vld [vmem:[#allocation10_spill] sm:$0xff] }
 0x349   :  { %v1434_v0 = vpop.eup %1433  ;;  %v2022_v33 = vmul.f32 %v877_v3, %v1931_v24  ;;  %v2025_v45 = vmul.f32 %v877_v3, %v1936_v30  ;;  %v890_v55 = vmul.f32 %v874_v22, %v1884_v19  ;;  %v2029_v11 = vmul.f32 %v878_v15, %v1941_v25 }
 0x34a   :  { %v1436_v28 = vpop.eup %1435  ;;  %v2032_v21 = vmul.f32 %v878_v15, %v1945_v53  ;;  %v942_v48 = vmul.f32 0.0, %v1432_v17  ;;  %1441 = vpow2.f32 %v828_v54  ;;  %v943_v51 = vmul.f32 0.0, %v1434_v0  ;;  %v737_v49 = vpop.permute.xlu2 %736 }
 0x34b   :  { %v792_v18 = vperm.slane %v784_v47, 0  ;;  %v813_v39 = vmul.f32 %v791_v37, %v1877_v20  ;;  %v1438_v24 = vpop.eup %1437  ;;  %1443 = vpow2.f32 %v830_v38  ;;  %v871_v30 = vrot.slane %v1978_v12, 5 }
 0x34c   :  { %v947_v41 = vadd.f32 %v942_v48, %v890_v55  ;;  %v812_v35 = vmul.f32 %v791_v37, %v1872_v26  ;;  %v948_v19 = vadd.f32 %v943_v51, %v891_v56  ;;  %v872_v40 = vrot.slane %v1978_v12, 6 }
 0x34d   :  { %v815_v25 = vmul.f32 %v792_v18, %v1877_v20  ;;  %v814_v53 = vmul.f32 %v792_v18, %v1872_v26  ;;  %1445 = vpow2.f32 %v832_v2  ;;  %v879_v47 = vperm.slane %v871_v30, 0 }
 0x34e   :  { %v952_v63 = vmul.f32 %v947_v41, %v1961_v46  ;;  %v966_v57 = vmul.f32 %v1436_v28, %v947_v41  ;;  %v1440_v50 = vpop.eup %1439  ;;  %v2042_v54 = vsel %vm242_vm3, %v629_v9, %v725_v52  ;;  %1447 = vpow2.f32 %v834_v31 }
 0x34f   :  { %v953_v42 = vmul.f32 %v948_v19, %v1957_v29  ;;  %v967_v38 = vmul.f32 %v1438_v24, %v948_v19  ;;  %1449 = vpow2.f32 %v836_v59  ;;  %v2046_v22 = vsel %vm242_vm3, %v641_v8, %v737_v49 }
 0x350   :  { %v971_v13 = vadd.f32 %v966_v57, %v892_v58  ;;  %v2049_v10 = vmul.f32 %v879_v47, %v2133_v60  ;;  %v1442_v2 = vpop.eup %1441  ;;  %v838_v15 = vmul.f32 1.442695, %v812_v35  ;;  %v880_v56 = vperm.slane %v872_v40, 0 }
 0x351   :  { %v954_v46 = vadd.f32 %v953_v42, %v952_v63  ;;  %v972_v3 = vadd.f32 %v967_v38, %v893_v5  ;;  %v1444_v37 = vpop.eup %1443  ;;  %v840_v29 = vmul.f32 1.442695, %v813_v39  ;;  %v900_v59 = vmul.f32 %v879_v47, %v1893_v14 }
 0x352   :  { %v635_v17 = vpop.permute.xlu1 %634  ;;  %v976_v31 = vmul.f32 %v971_v13, %v1898_v23  ;;  %v990_v0 = vmul.f32 %v1440_v50, %v971_v13  ;;  %v2055_v9 = vmul.f32 %v880_v56, %v1949_v34  ;;  %v785_v28 = vrot.slane %v1964_v32, 7 }
 0x353   :  { %v977_v58 = vmul.f32 %v972_v3, %v1975_v16  ;;  %v991_v8 = vmul.f32 %v1442_v2, %v972_v3  ;;  %v1446_v55 = vpop.eup %1445  ;;  %v844_v48 = vmul.f32 1.442695, %v815_v25  ;;  %v2059_v51 = vmul.f32 %v880_v56, %v1954_v4 }
 0x354   :  { %v995_v5 = vadd.f32 %v990_v0, %v894_v6  ;;  %v955_v18 = vrot.slane %v954_v46, 4  ;;  %v1448_v23 = vpop.eup %1447  ;;  %1451 = vpow2.f32 %v838_v15  ;;  %v793_v14 = vperm.slane %v785_v28, 0 }
 0x355   :  { %v978_v24 = vadd.f32 %v977_v58, %v976_v31  ;;  %v996_v39 = vadd.f32 %v991_v8, %v895_v1  ;;  %v1450_v41 = vpop.eup %1449  ;;  %v842_v34 = vmul.f32 1.442695, %v814_v53  ;;  %v873_v35 = vrot.slane %v1978_v12, 7 }
 0x356   :  { %v1000_v16 = vmul.f32 %v995_v5, %v1968_v36  ;;  %v1014_v30 = vmul.f32 %v1444_v37, %v995_v5  ;;  %v817_v4 = vmul.f32 %v793_v14, %v1877_v20  ;;  %1453 = vpow2.f32 %v840_v29 }
 0x357   :  { %v979_v32 = vrot.slane %v978_v24, 4  ;;  %v1001_v6 = vmul.f32 %v996_v39, %v1911_v27  ;;  %v1015_v19 = vmul.f32 %v1446_v55, %v996_v39  ;;  %v816_v1 = vmul.f32 %v793_v14, %v1872_v26 }
 0x358   :  { %v1019_v49 = vadd.f32 %v1014_v30, %v2022_v33  ;;  %v956_v25 = vadd.f32 %v955_v18, %v954_v46  ;;  %1455 = vpow2.f32 %v844_v48  ;;  %v881_v27 = vperm.slane %v873_v35, 0 }
 0x359   :  { %v980_v40 = vadd.f32 %v979_v32, %v978_v24  ;;  %v1002_v52 = vadd.f32 %v1001_v6, %v1000_v16  ;;  %v1020_v36 = vadd.f32 %v1015_v19, %v2025_v45  ;;  %1457 = vpow2.f32 %v842_v34 }
 0x35a   :  { %v1024_v53 = vmul.f32 %v1019_v49, %v1902_v62  ;;  %v1038_v12 = vmul.f32 %v1448_v23, %v1019_v49  ;;  %v731_v63 = vpop.permute.xlu1 %730  ;;  %v1452_v57 = vpop.eup %1451  ;;  %v848_v50 = vmul.f32 1.442695, %v817_v4  ;;  %v846_v42 = vmul.f32 1.442695, %v816_v1 }
 0x35b   :  { %v1003_v47 = vrot.slane %v1002_v52, 4  ;;  %v1025_v20 = vmul.f32 %v1020_v36, %v2009_v7  ;;  %v1039_v33 = vmul.f32 %v1450_v41, %v1020_v36  ;;  %v957_v38 = vrot.slane %v956_v25, 2 }
 0x35c   :  { %v1043_v26 = vadd.f32 %v1038_v12, %v2029_v11  ;;  %v981_v13 = vrot.slane %v980_v40, 2  ;;  %v772_v62 = vsel %vm242_vm3, %v635_v17, %v731_v63  ;;  %v1454_v46 = vpop.eup %1453  ;;  %1459 = vpow2.f32 %v846_v42 }
 0x35d   :  { %v1004_v60 = vadd.f32 %v1003_v47, %v1002_v52  ;;  %v1026_v45 = vadd.f32 %v1025_v20, %v1024_v53  ;;  %v1044_v2 = vadd.f32 %v1039_v33, %v2032_v21  ;;  %v958_v56 = vadd.f32 %v957_v38, %v956_v25  ;;  %v743_v20 = vpop.permute.xlu2 %742 }
 0x35e   :  { %v1048_v3 = vmul.f32 %v1043_v26, %v2004_v61  ;;  %v1062_v15 = vmul.f32 %v1452_v57, %v1043_v26  ;;  %v1456_v7 = vpop.eup %1455  ;;  %1461 = vpow2.f32 %v848_v50  ;;  %v982_v28 = vadd.f32 %v981_v13, %v980_v40 }
 0x35f   :  { %v1005_v37 = vrot.slane %v1004_v60, 2  ;;  %v1027_v31 = vrot.slane %v1026_v45, 4  ;;  %v1049_v11 = vmul.f32 %v1044_v2, %v2042_v54  ;;  %v1063_v0 = vmul.f32 %v1454_v46, %v1044_v2  ;;  %v1458_v29 = vpop.eup %1457 }
 0x360   :  { %v1067_v58 = vadd.f32 %v1062_v15, %v900_v59  ;;  %v959_v8 = vrot.slane %v958_v56, 1  ;;  %v905_v18 = vmul.f32 %v881_v27, %v1986_v43  ;;  %v983_v23 = vrot.slane %v982_v28, 1  ;;  %v1351_v15 = vld [vmem:[%s2126_s10 + $0x18] sm:$0xff] }
 0x361   :  { %v1028_v21 = vadd.f32 %v1027_v31, %v1026_v45  ;;  %v1050_v55 = vadd.f32 %v1049_v11, %v1048_v3  ;;  %v1068_v17 = vadd.f32 %v1063_v0, %v2049_v10  ;;  %v1006_v5 = vadd.f32 %v1005_v37, %v1004_v60  ;;  %v2134_v60 = vld [vmem:[#allocation11_spill] sm:$0xff]  ;;  %1241 = vmatpush.bf16.msra.mxu3 %v1351_v15  ;;  %v1350_v37 = vld [vmem:[%s2126_s10 + $0x10] sm:$0xff]  ;;  %v1349_v0 = vld [vmem:[%s2126_s10 + $0x8] sm:$0xff] }
 0x362   :  { %v1086_v61 = vmul.f32 %v1458_v29, %v1067_v58  ;;  %v1072_v48 = vmul.f32 %v1067_v58, %v772_v62  ;;  %v1460_v41 = vpop.eup %1459  ;;  %v960_v16 = vadd.f32 %v959_v8, %v958_v56  ;;  %v984_v30 = vadd.f32 %v983_v23, %v982_v28  ;;  %v665_v28 = vpop.permute.xlu0 %664 }
 0x363   :  { %v1029_v24 = vrot.slane %v1028_v21, 2  ;;  %v1051_v39 = vrot.slane %v1050_v55, 4  ;;  %v1073_v54 = vmul.f32 %v1068_v17, %v2046_v22  ;;  %v1087_v14 = vmul.f32 %v1456_v7, %v1068_v17 }
 0x364   :  { %v1091_v59 = vadd.f32 %v1086_v61, %v2055_v9  ;;  %v1007_v34 = vrot.slane %v1006_v5, 1  ;;  %v1462_v19 = vpop.eup %1461  ;;  %v904_v43 = vmul.f32 %v881_v27, %v1990_v44  ;;  %v1129_v1 = vsel %vm150_vm9, %v960_v16, %v984_v30 }
 0x365   :  { %v1030_v35 = vadd.f32 %v1029_v24, %v1028_v21  ;;  %v1052_v32 = vadd.f32 %v1051_v39, %v1050_v55  ;;  %v1074_v10 = vadd.f32 %v1073_v54, %v1072_v48  ;;  %v1092_v6 = vadd.f32 %v1087_v14, %v2059_v51  ;;  %v659_v56 = vpop.permute.xlu2 %658  ;;  %1242 = vmatpush.bf16.msra.mxu3 %v1350_v37 }
 0x366   :  { %v1110_v4 = vmul.f32 %v1460_v41, %v1091_v59  ;;  %v1008_v49 = vadd.f32 %v1007_v34, %v1006_v5  ;;  %vm1135_vm9 = vcmask 1044480   ;;  %v774_v45 = vsel %vm242_vm3, %v2134_v60, %v743_v20  ;;  %v1348_v34 = vld [vmem:[%s2126_s10] sm:$0xff]  ;;  %s1493_s10 = smov [#allocation6]  }
 0x367   :  { %v1053_v22 = vrot.slane %v1052_v32, 2  ;;  %v1075_v25 = vrot.slane %v1074_v10, 4  ;;  %v1111_v40 = vmul.f32 %v1462_v19, %v1092_v6  ;;  %v1031_v52 = vrot.slane %v1030_v35, 1  ;;  %s1259_s19 = sshll.u32 %s1493_s10, 4  ;;  %s1260_s19 = int_to_ptr.vmem [resolvable:$true] %s1259_s19 }
 0x368   :  { %v1115_v9 = vadd.f32 %v1110_v4, %v904_v43  ;;  %v1130_v36 = vsel %vm138_vm8, %v1129_v1, %v1008_v49  ;;  %v1096_v62 = vmul.f32 %v1091_v59, %v774_v45  ;;  %vm1137_vm8 = vcmask 1045504   ;;  %v1400_v4 = vld [vmem:[%s2127_s11] ss:$0 sm:$0xff] }
 0x369   :  { %v1054_v53 = vadd.f32 %v1053_v22, %v1052_v32  ;;  %v1076_v12 = vadd.f32 %v1075_v25, %v1074_v10  ;;  %v1116_v57 = vadd.f32 %v1111_v40, %v905_v18  ;;  %v1032_v51 = vadd.f32 %v1031_v52, %v1030_v35  ;;  %1243 = vmatpush.bf16.msra.mxu3 %v1349_v0  ;;  %v1463_v22 = vld [vmem:[%s2116_s0] sm:$0xff] }
 0x36a   :  { %v653_v63 = vpop.permute.xlu1 %652  ;;  %v1192_v35 = vpop.permute.xlu0 %1191 }
 0x36b   :  { %v1055_v47 = vrot.slane %v1054_v53, 1  ;;  %v1077_v44 = vrot.slane %v1076_v12, 2  ;;  %v1132_v27 = vsel %vm1131_vm5, %v1130_v36, %v1032_v51 }
 0x36d   :  { %v1056_v33 = vadd.f32 %v1055_v47, %v1054_v53  ;;  %v1078_v50 = vadd.f32 %v1077_v44, %v1076_v12  ;;  %1244 = vmatpush.bf16.msra.mxu3 %v1348_v34 }
 0x36f   :  { %v1079_v26 = vrot.slane %v1078_v50, 1  ;;  %v1134_v42 = vsel %vm1133_vm6, %v1132_v27, %v1056_v33 }
 0x371   :  { %v1080_v13 = vadd.f32 %v1079_v26, %v1078_v50 }
 0x372   :  { %v749_v38 = vpop.permute.xlu1 %748  ;;  %v761_v58 = vpop.permute.xlu2 %760 }
 0x373   :  { %v775_v2 = vsel %vm242_vm3, %v653_v63, %v749_v38  ;;  %v1136_v3 = vsel %vm1135_vm9, %v1134_v42, %v1080_v13  ;;  %v777_v55 = vsel %vm242_vm3, %v665_v28, %v761_v58 }
 0x374   :  { %v1097_v46 = vmul.f32 %v1092_v6, %v775_v2  ;;  %v1121_v48 = vmul.f32 %v1116_v57, %v777_v55 }
 0x376   :  { %v1098_v7 = vadd.f32 %v1097_v46, %v1096_v62 }
 0x378   :  { %v1099_v31 = vrot.slane %v1098_v7, 4 }
 0x37a   :  { %v1100_v11 = vadd.f32 %v1099_v31, %v1098_v7  ;;  %v1190_v32 = vpop.permute.xlu2 %1189 }
 0x37c   :  { %v1101_v29 = vrot.slane %v1100_v11, 2 }
 0x37e   :  { %v1102_v8 = vadd.f32 %v1101_v29, %v1100_v11 }
 0x380   :  { %v1103_v21 = vrot.slane %v1102_v8, 1 }
 0x382   :  { %v755_v17 = vpop.permute.xlu1 %754  ;;  %v1104_v5 = vadd.f32 %v1103_v21, %v1102_v8 }
 0x383   :  { %v776_v61 = vsel %vm242_vm3, %v659_v56, %v755_v17 }
 0x384   :  { %v1120_v18 = vmul.f32 %v1115_v9, %v776_v61  ;;  %v1138_v23 = vsel %vm1137_vm8, %v1136_v3, %v1104_v5  ;;  %v1464_v9 = vld [vmem:[%s2116_s0 + $0x8] sm:$0xff] }
 0x386   :  { %v1122_v24 = vadd.f32 %v1121_v48, %v1120_v18 }
 0x388   :  { %v1123_v39 = vrot.slane %v1122_v24, 4 }
 0x38a   :  { %v1124_v54 = vadd.f32 %v1123_v39, %v1122_v24 }
 0x38c   :  { %v1125_v14 = vrot.slane %v1124_v54, 2 }
 0x38e   :  { %v1126_v41 = vadd.f32 %v1125_v14, %v1124_v54 }
 0x390   :  { %v1127_v59 = vrot.slane %v1126_v41, 1 }
 0x392   :  { %v1128_v16 = vadd.f32 %v1127_v59, %v1126_v41 }
 0x394   :  { %v1140_v30 = vsel %vm1139_vm7, %v1138_v23, %v1128_v16 }
 0x395   :  { %1144 = vrot.lane.b32.xlu1 %v1140_v30, %s1492_s23  ;;  %v1195_v6 = vmul.f32 %v1190_v32, %v1140_v30 }
 0x407   :  { %v1145_v10 = vpop.permute.xlu1 %1144 }
 0x408   :  { %v1196_v19 = vmul.f32 %v1192_v35, %v1145_v10 }
 0x40a   :  { %v1197_v43 = vpack.c.bf16 %v1196_v19, %v1195_v6 }
 0x40c   :  { %1341 = vmatmul.msk.bf16.vlgmr.msra.gmra.mxu3 %vm242_vm3, %v1197_v43 }
 0x48f   :  { %v1246_v49 = vpop.f32.mrf.mxu3 }
 0x490   :  { %v1247_v1 = vadd.f32 %v1400_v4, %v1246_v49 }
 0x492   :  { %v1251_v25 = vadd.f32 %v1463_v22, %v1247_v1 }
 0x494   :  { %1253 = vst.msk [vmem:[#allocation6] sm:$0xff] %vm47_vm0, %v1251_v25 }
 0x497   :  { %v1248_v40 = vpop.f32.mrf.mxu3 }
 0x498   :  { %v1249_v52 = vadd.f32 %v1400_v4, %v1248_v40 }
 0x49a   :  { %v1252_v36 = vadd.f32 %v1464_v9, %v1249_v52 }
 0x49c   :  { %1254 = vst.msk [vmem:[#allocation6 + $0x8] sm:$0xff] %vm47_vm0, %v1252_v36 }
 0x49d   :  { %1267 = dma.vmem_to_hbm [thread:$0]  %s1260_s19, 256, %s1262_s22, [#allocation7], %s1494_s6, %s1494_s6, %s1495_s4  }
 0x49e   :  { %1489 = dma.done.wait [#allocation7], 256  }
 0x49f   :  { %1490 = vsyncadd [#allocation7], 4294967040 }
 0x4a0   :  { %1272 = vsyncpa [#allocation7], 1 }

</bundles_post_ra>
